<compile_context>
chip_gen: v5e
topology: v5e:2x2
jax: 0.10.0
libtpu: 0.0.40
codegen_flags: <defaults>
</compile_context>

<pallas_src>
import functools

import numpy as np
import jax
import jax.numpy as jnp
from jax import lax
from jax.experimental import pallas as pl
from jax.experimental.pallas import tpu as pltpu
from jax.scipy.special import erf as _jsp_erf


def _round_up(x, m):
    return ((x + m - 1) // m) * m


# ----------------------------------------------------------------------------
# Exact-erf GELU (matches F.gelu default) via the Eigen/XLA f32 rational erf
# approximation — mul/add/div only, guaranteed to lower on the VPU.
# ----------------------------------------------------------------------------
def _erf_f32(x):
    a = jnp.clip(x, -3.832506856900231, 3.832506856900231)
    z = a * a
    p = jnp.float32(-2.72614225801306e-10)
    p = p * z + jnp.float32(2.77068142495902e-08)
    p = p * z + jnp.float32(-2.10102402082508e-06)
    p = p * z + jnp.float32(-5.69250639462346e-05)
    p = p * z + jnp.float32(-7.34990630326855e-04)
    p = p * z + jnp.float32(-2.95459980854025e-03)
    p = p * z + jnp.float32(-1.60960333262415e-02)
    p = p * a
    q = jnp.float32(-1.45660718464996e-05)
    q = q * z + jnp.float32(-2.13374055278905e-04)
    q = q * z + jnp.float32(-1.68282697438203e-03)
    q = q * z + jnp.float32(-7.37332916720468e-03)
    q = q * z + jnp.float32(-1.42647390514189e-02)
    return p / q


def _gelu(x):
    return 0.5 * x * (1.0 + _erf_f32(x * jnp.float32(0.7071067811865475)))


# ----------------------------------------------------------------------------
# Fused encoder kernel: one grid step = TB batch elements (flattened to M=TB*T
# rows), full network.  All activations stay in vregs/VMEM; weights are small,
# grid-invariant VMEM blocks.
#   x_ref  : (M, D)        raw input features (may contain NaNs)
#   m_ref  : (M, 1)        'all_true' mask as float
#   fcw/fcb: (D, CW)/(1, CW)
#   w1/w2  : (n_blocks, 3*CW, CW)  tap-fused conv weights    b1/b2: (n_blocks, 1, CW)
#   pw/pb  : (CW, CW)/(1, CW)      final-block 1x1 projector
#   o_ref  : (M, CW)
# ----------------------------------------------------------------------------
def _ts_encoder_kernel(x_ref, m_ref, fcw_ref, fcb_ref,
                       w1_ref, b1_ref, w2_ref, b2_ref,
                       pw_ref, pb_ref, o_ref,
                       *, dilations, t, rows, cw):
    n_blocks = len(dilations)

    # --- NaN-row detect + zero, input_fc, ('all_true' & nan_mask) zeroing ----
    x = x_ref[...]                                                       # (M, D)
    nan_row = jnp.max(jnp.where(x != x, 1.0, 0.0), axis=-1, keepdims=True) > 0.5
    x = jnp.where(nan_row, 0.0, x)                                       # x[~nan_mask] = 0
    h = jnp.dot(x, fcw_ref[...], preferred_element_type=jnp.float32) + fcb_ref[...]
    valid = jnp.logical_and(m_ref[...] > 0.5, jnp.logical_not(nan_row))  # mask &= nan_mask
    h = jnp.where(valid, h, 0.0)                                         # x[~mask] = 0

    # Per-row time index within its sample (batch is folded into the row axis);
    # used to zero rows where a shifted tap would cross a sample boundary / pad region.
    tt = lax.broadcasted_iota(jnp.int32, (rows, 1), 0) % t

    def dconv(u, w, bias, d):
        # SamePad dilated conv with the 3 taps fused along the contraction dim:
        #   [u(t-d) | u(t) | u(t+d)]  (M, 3*CW)  @  w  (3*CW, CW)
        # Time shifts are in-register sublane rolls (XLU), masked at the edges.
        sh_m = d % rows
        sh_p = (rows - d) % rows
        um = pltpu.roll(u, sh_m, 0) if sh_m else u
        up = pltpu.roll(u, sh_p, 0) if sh_p else u
        um = jnp.where(tt >= d, um, 0.0)          # u(t-d), zero where t-d < 0
        up = jnp.where(tt < t - d, up, 0.0)       # u(t+d), zero where t+d >= T
        cat = jnp.concatenate([um, u, up], axis=-1)
        return jnp.dot(cat, w, preferred_element_type=jnp.float32) + bias

    for i in range(n_blocks):
        d = dilations[i]
        if i == n_blocks - 1:            # final block carries the 1x1 projector
            res = jnp.dot(h, pw_ref[...], preferred_element_type=jnp.float32) + pb_ref[...]
        else:                            # Cin == Cout, not final -> identity residual
            res = h
        u = _gelu(h)
        u = dconv(u, w1_ref[i], b1_ref[i], d)
        u = _gelu(u)
        u = dconv(u, w2_ref[i], b2_ref[i], d)
        h = u + res

    o_ref[...] = h


def _pick_batch_tile(b, t, target_rows=256, max_rows=4096):
    """Largest-enough divisor of b so that TB*T feeds the MXU (>=256 rows if possible)
    while keeping the per-step tile comfortably inside VMEM (also on v7x's 64 MiB)."""
    divisors = [d for d in range(1, b + 1) if b % d == 0]
    fitting = [d for d in divisors if d * t <= max_rows] or [b]
    big_enough = [d for d in fitting if d * t >= target_rows]
    tb = min(big_enough) if big_enough else max(fitting)
    if (tb * t) % 8 != 0 and tb != b:
        tb = b   # full-array block sidesteps the (8, .) block-shape constraint
    return tb


def ts_encoder_forward(x, mask, packed):
    """x: (B, T, input_dims) f32 (may contain NaN rows); mask: (B, T) 0/1 ('all_true')."""
    b, t, d_in = x.shape
    cw = packed["fc_w"].shape[1]
    dilations = packed["dilations"]
    tb = _pick_batch_tile(b, t)
    rows = tb * t

    # Host-side flatten (free reshape): batch folds into the matmul M dimension.
    x2 = x.astype(jnp.float32).reshape(b * t, d_in)
    m2 = mask.astype(jnp.float32).reshape(b * t, 1)

    kernel = functools.partial(
        _ts_encoder_kernel, dilations=tuple(dilations), t=t, rows=rows, cw=cw)

    out = pl.pallas_call(
        kernel,
        out_shape=jax.ShapeDtypeStruct((b * t, cw), jnp.float32),
        grid=(b // tb,),
        in_specs=[
            pl.BlockSpec((rows, d_in), lambda i: (i, 0)),                 # x (flattened)
            pl.BlockSpec((rows, 1), lambda i: (i, 0)),                    # mask
            pl.BlockSpec(packed["fc_w"].shape, lambda i: (0, 0)),         # fc_w
            pl.BlockSpec(packed["fc_b"].shape, lambda i: (0, 0)),         # fc_b
            pl.BlockSpec(packed["w1"].shape, lambda i: (0, 0, 0)),        # w1 (tap-fused)
            pl.BlockSpec(packed["b1"].shape, lambda i: (0, 0, 0)),        # b1
            pl.BlockSpec(packed["w2"].shape, lambda i: (0, 0, 0)),        # w2 (tap-fused)
            pl.BlockSpec(packed["b2"].shape, lambda i: (0, 0, 0)),        # b2
            pl.BlockSpec(packed["proj_w"].shape, lambda i: (0, 0)),       # proj_w
            pl.BlockSpec(packed["proj_b"].shape, lambda i: (0, 0)),       # proj_b
        ],
        out_specs=pl.BlockSpec((rows, cw), lambda i: (i, 0)),
        compiler_params=pltpu.CompilerParams(
            dimension_semantics=("parallel",)),                           # v7x: 2 TCs split batch
    )(x2, m2, packed["fc_w"], packed["fc_b"],
      packed["w1"], packed["b1"], packed["w2"], packed["b2"],
      packed["proj_w"], packed["proj_b"])

    # repr_dropout(p=0.1) is the identity in eval mode; strip channel padding.
    out = out.reshape(b, t, cw)
    return out[..., :packed["output_dims"]]


# ----------------------------------------------------------------------------
# Parameters: logical init (mirrors PyTorch shapes) + packing into tap-fused,
# true-channel-width arrays for the kernel.
# ----------------------------------------------------------------------------
def init_params(key, input_dims, hidden_dims, output_dims, depth):
    channels = [hidden_dims] * depth + [output_dims]
    n_blocks = len(channels)
    keys = jax.random.split(key, 2 + 6 * n_blocks)
    ki = iter(keys)

    def w_init(k, shape, fan_in):
        return jax.random.normal(k, shape, jnp.float32) / jnp.sqrt(jnp.float32(fan_in))

    params = {
        "fc_w": w_init(next(ki), (input_dims, hidden_dims), input_dims),
        "fc_b": w_init(next(ki), (1, hidden_dims), input_dims),
        "blocks": [],
    }
    in_ch = hidden_dims
    for i, out_ch in enumerate(channels):
        final = (i == n_blocks - 1)
        blk = {
            "dilation": 2 ** i,
            "w1": w_init(next(ki), (3, in_ch, out_ch), 3 * in_ch),
            "b1": w_init(next(ki), (1, out_ch), 3 * in_ch),
            "w2": w_init(next(ki), (3, out_ch, out_ch), 3 * out_ch),
            "b2": w_init(next(ki), (1, out_ch), 3 * out_ch),
        }
        if (in_ch != out_ch) or final:
            blk["proj_w"] = w_init(next(ki), (in_ch, out_ch), in_ch)
            blk["proj_b"] = w_init(next(ki), (1, out_ch), in_ch)
        else:
            blk["proj_w"] = None
            blk["proj_b"] = None
            next(ki)
            next(ki)
        params["blocks"].append(blk)
        in_ch = out_ch
    return params


def pack_params(params, output_dims):
    fc_w_l = np.asarray(params["fc_w"])
    fc_b_l = np.asarray(params["fc_b"])
    d_in, hid = fc_w_l.shape
    blocks = params["blocks"]
    n_blocks = len(blocks)
    cw = max(hid, output_dims)            # true channel width (no 128 lane padding)

    fc_w = np.zeros((d_in, cw), np.float32)
    fc_w[:, :hid] = fc_w_l
    fc_b = np.zeros((1, cw), np.float32)
    fc_b[0, :hid] = fc_b_l[0]

    w1 = np.zeros((n_blocks, 3 * cw, cw), np.float32)
    b1 = np.zeros((n_blocks, 1, cw), np.float32)
    w2 = np.zeros((n_blocks, 3 * cw, cw), np.float32)
    b2 = np.zeros((n_blocks, 1, cw), np.float32)
    proj_w = np.zeros((cw, cw), np.float32)
    proj_b = np.zeros((1, cw), np.float32)
    dilations = []

    for i, blk in enumerate(blocks):
        final = (i == n_blocks - 1)
        # Single projector slot in the kernel: only the final block may carry one.
        assert blk["proj_w"] is None or final, \
            "pack_params assumes only the final ConvBlock has a 1x1 projector"
        if final:
            assert blk["proj_w"] is not None
        w1_l = np.asarray(blk["w1"]); b1_l = np.asarray(blk["b1"])
        w2_l = np.asarray(blk["w2"]); b2_l = np.asarray(blk["b2"])
        cin1, cout = w1_l.shape[1], w1_l.shape[2]
        cin2 = w2_l.shape[1]
        for k in range(3):                        # rows [k*cw, k*cw+cin) = tap k
            w1[i, k * cw:k * cw + cin1, :cout] = w1_l[k]
            w2[i, k * cw:k * cw + cin2, :cout] = w2_l[k]
        b1[i, 0, :cout] = b1_l[0]
        b2[i, 0, :cout] = b2_l[0]
        if final:
            pw_l = np.asarray(blk["proj_w"]); pb_l = np.asarray(blk["proj_b"])
            proj_w[:pw_l.shape[0], :pw_l.shape[1]] = pw_l
            proj_b[0, :pb_l.shape[1]] = pb_l[0]
        dilations.append(int(blk["dilation"]))

    return {
        "fc_w": jnp.asarray(fc_w), "fc_b": jnp.asarray(fc_b),
        "w1": jnp.asarray(w1), "b1": jnp.asarray(b1),
        "w2": jnp.asarray(w2), "b2": jnp.asarray(b2),
        "proj_w": jnp.asarray(proj_w), "proj_b": jnp.asarray(proj_b),
        "dilations": tuple(dilations), "output_dims": int(output_dims),
    }


# ---- pure-JAX reference (mirrors the PyTorch forward, channels-last) --------
def _ref_gelu(x):
    return 0.5 * x * (1.0 + _jsp_erf(x / jnp.sqrt(jnp.float32(2.0))))


def _ref_dconv(h, w, b, dilation):
    bsz, t, _ = h.shape
    hp = jnp.pad(h, ((0, 0), (dilation, dilation), (0, 0)))
    out = 0.0
    for k in range(3):
        out = out + hp[:, k * dilation:k * dilation + t, :] @ w[k]
    return out + b


def reference_forward(x, mask, params):
    nan_mask = ~jnp.any(jnp.isnan(x), axis=-1)
    x = jnp.where(nan_mask[..., None], x, 0.0)
    h = x @ params["fc_w"] + params["fc_b"]
    m = (mask > 0.5) & nan_mask
    h = jnp.where(m[..., None], h, 0.0)
    for blk in params["blocks"]:
        d = blk["dilation"]
        res = h if blk["proj_w"] is None else h @ blk["proj_w"] + blk["proj_b"]
        u = _ref_gelu(h)
        u = _ref_dconv(u, blk["w1"], blk["b1"], d)
        u = _ref_gelu(u)
        u = _ref_dconv(u, blk["w2"], blk["b2"], d)
        h = u + res
    return h


# ----------------------------------------------------------------------------
if __name__ == "__main__":
    B, T = 2, 8
    input_dims = 48        # 40 <= input_dims <= 70 -> med-embedding branches not taken
    hidden_dims = 32
    output_dims = 16
    depth = 3              # blocks: dilations 1, 2, 4, 8 (last block has 1x1 projector)

    key = jax.random.PRNGKey(0)
    k_param, k_x = jax.random.split(key)
    params = init_params(k_param, input_dims, hidden_dims, output_dims, depth)
    packed = pack_params(params, output_dims)

    x = jax.random.normal(k_x, (B, T, input_dims), jnp.float32)
    x = x.at[1, 3, 5].set(jnp.nan)                 # exercise the NaN-row path
    mask = jnp.ones((B, T), jnp.float32)           # 'all_true' mask (eval mode)

    out = ts_encoder_forward(x, mask, packed)
    out = jax.block_until_ready(out)

    with jax.default_matmul_precision("highest"):  # f32-accurate reference matmuls
        ref = reference_forward(x, mask, params)

    np.testing.assert_allclose(np.asarray(out), np.asarray(ref), rtol=1e-3, atol=1e-4)
    assert out.shape == (B, T, output_dims)
    print("KERNEL_OK")
</pallas_src>

<mosaic_0001>
module attributes {stable_mosaic.version = 11 : i64} {
  func.func @_ts_encoder_kernel(%arg0: i32, %arg1: memref<16x48xf32, #tpu.memory_space<vmem>>, %arg2: memref<16x1xf32, #tpu.memory_space<vmem>>, %arg3: memref<48x32xf32, #tpu.memory_space<vmem>>, %arg4: memref<1x32xf32, #tpu.memory_space<vmem>>, %arg5: memref<4x96x32xf32, #tpu.memory_space<vmem>>, %arg6: memref<4x1x32xf32, #tpu.memory_space<vmem>>, %arg7: memref<4x96x32xf32, #tpu.memory_space<vmem>>, %arg8: memref<4x1x32xf32, #tpu.memory_space<vmem>>, %arg9: memref<32x32xf32, #tpu.memory_space<vmem>>, %arg10: memref<1x32xf32, #tpu.memory_space<vmem>>, %arg11: memref<16x32xf32, #tpu.memory_space<vmem>>) attributes {dimension_semantics = [#tpu.dimension_semantics<parallel>], iteration_bounds = array<i64: 1>, scalar_prefetch = 0 : i64, scratch_operands = 0 : i64, tpu.core_type = #tpu.core_type<tc>, window_params = [{transform_indices = @transform_0, window_bounds = array<i64: 16, 48>}, {transform_indices = @transform_1, window_bounds = array<i64: 16, 1>}, {pipeline_mode = #tpu.pipeline_mode<synchronous>, transform_indices = @transform_2, window_bounds = array<i64: 48, 32>}, {pipeline_mode = #tpu.pipeline_mode<synchronous>, transform_indices = @transform_3, window_bounds = array<i64: 1, 32>}, {pipeline_mode = #tpu.pipeline_mode<synchronous>, transform_indices = @transform_4, window_bounds = array<i64: 4, 96, 32>}, {pipeline_mode = #tpu.pipeline_mode<synchronous>, transform_indices = @transform_5, window_bounds = array<i64: 4, 1, 32>}, {pipeline_mode = #tpu.pipeline_mode<synchronous>, transform_indices = @transform_6, window_bounds = array<i64: 4, 96, 32>}, {pipeline_mode = #tpu.pipeline_mode<synchronous>, transform_indices = @transform_7, window_bounds = array<i64: 4, 1, 32>}, {pipeline_mode = #tpu.pipeline_mode<synchronous>, transform_indices = @transform_8, window_bounds = array<i64: 32, 32>}, {pipeline_mode = #tpu.pipeline_mode<synchronous>, transform_indices = @transform_9, window_bounds = array<i64: 1, 32>}, {transform_indices = @transform_10, window_bounds = array<i64: 16, 32>}]} {
    %c0 = arith.constant 0 : index
    %c0_0 = arith.constant 0 : index
    %0 = vector.load %arg1[%c0, %c0_0] : memref<16x48xf32, #tpu.memory_space<vmem>>, vector<16x48xf32>
    %1 = arith.cmpf one, %0, %0 : vector<16x48xf32>
    %cst = arith.constant 1.000000e+00 : f32
    %cst_1 = arith.constant 0.000000e+00 : f32
    %2 = vector.broadcast %cst : f32 to vector<16x48xf32>
    %3 = vector.broadcast %cst_1 : f32 to vector<16x48xf32>
    %4 = arith.select %1, %2, %3 : vector<16x48xi1>, vector<16x48xf32>
    %cst_2 = arith.constant dense<0xFF800000> : vector<16xf32>
    %5 = vector.multi_reduction <maximumf>, %4, %cst_2 [1] : vector<16x48xf32> to vector<16xf32>
    %6 = vector.shape_cast %5 : vector<16xf32> to vector<16x1xf32>
    %cst_3 = arith.constant 5.000000e-01 : f32
    %7 = vector.broadcast %cst_3 : f32 to vector<16x1xf32>
    %8 = arith.cmpf ogt, %6, %7 : vector<16x1xf32>
    %cst_4 = arith.constant 0.000000e+00 : f32
    %9 = vector.shape_cast %8 : vector<16x1xi1> to vector<16x1xi1>
    %10 = vector.broadcast %9 : vector<16x1xi1> to vector<16x48xi1>
    %11 = vector.broadcast %cst_4 : f32 to vector<16x48xf32>
    %12 = arith.select %10, %11, %0 : vector<16x48xi1>, vector<16x48xf32>
    %c0_5 = arith.constant 0 : index
    %c0_6 = arith.constant 0 : index
    %13 = vector.load %arg3[%c0_5, %c0_6] : memref<48x32xf32, #tpu.memory_space<vmem>>, vector<48x32xf32>
    %cst_7 = arith.constant dense<0.000000e+00> : vector<16x32xf32>
    %14 = tpu.matmul %12, %13, %cst_7 {dimension_numbers = #tpu.dot_dimension_numbers<[1], [0], [0], [1], [0, 0, 1, 1], [], []>} : vector<16x48xf32>, vector<48x32xf32>, vector<16x32xf32> -> vector<16x32xf32>
    %c0_8 = arith.constant 0 : index
    %c0_9 = arith.constant 0 : index
    %15 = vector.load %arg4[%c0_8, %c0_9] : memref<1x32xf32, #tpu.memory_space<vmem>>, vector<1x32xf32>
    %16 = vector.broadcast %15 : vector<1x32xf32> to vector<16x32xf32>
    %17 = arith.addf %14, %16 : vector<16x32xf32>
    %c0_10 = arith.constant 0 : index
    %c0_11 = arith.constant 0 : index
    %18 = vector.load %arg2[%c0_10, %c0_11] : memref<16x1xf32, #tpu.memory_space<vmem>>, vector<16x1xf32>
    %cst_12 = arith.constant 5.000000e-01 : f32
    %19 = vector.broadcast %cst_12 : f32 to vector<16x1xf32>
    %20 = arith.cmpf ogt, %18, %19 : vector<16x1xf32>
    %cst_13 = arith.constant dense<true> : vector<16x1xi1>
    %21 = arith.xori %8, %cst_13 : vector<16x1xi1>
    %22 = arith.andi %20, %21 : vector<16x1xi1>
    %cst_14 = arith.constant 0.000000e+00 : f32
    %23 = vector.shape_cast %22 : vector<16x1xi1> to vector<16x1xi1>
    %24 = vector.broadcast %23 : vector<16x1xi1> to vector<16x32xi1>
    %25 = vector.broadcast %cst_14 : f32 to vector<16x32xf32>
    %26 = arith.select %24, %17, %25 : vector<16x32xi1>, vector<16x32xf32>
    %27 = tpu.iota {dimensions = array<i32: 0>} : vector<16x1xi32>
    %c8_i32 = arith.constant 8 : i32
    %c0_i32 = arith.constant 0 : i32
    %28 = arith.cmpi eq, %c8_i32, %c0_i32 : i32
    %c1_i32 = arith.constant 1 : i32
    %29 = arith.select %28, %c1_i32, %c8_i32 : i32
    %30 = vector.broadcast %29 : i32 to vector<16x1xi32>
    %31 = arith.remsi %27, %30 : vector<16x1xi32>
    %c0_i32_15 = arith.constant 0 : i32
    %32 = vector.broadcast %c0_i32_15 : i32 to vector<16x1xi32>
    %33 = arith.cmpi ne, %31, %32 : vector<16x1xi32>
    %c0_i32_16 = arith.constant 0 : i32
    %34 = vector.broadcast %c0_i32_16 : i32 to vector<16x1xi32>
    %35 = arith.cmpi slt, %31, %34 : vector<16x1xi32>
    %c0_i32_17 = arith.constant 0 : i32
    %36 = arith.cmpi slt, %29, %c0_i32_17 : i32
    %37 = vector.broadcast %36 : i1 to vector<16x1xi1>
    %38 = vector.broadcast %37 : vector<16x1xi1> to vector<16x1xi1>
    %39 = arith.xori %35, %38 : vector<16x1xi1>
    %40 = arith.andi %39, %33 : vector<16x1xi1>
    %41 = vector.broadcast %29 : i32 to vector<16x1xi32>
    %42 = arith.addi %31, %41 : vector<16x1xi32>
    %43 = arith.select %40, %42, %31 : vector<16x1xi1>, vector<16x1xi32>
    %cst_18 = arith.constant 5.000000e-01 : f32
    %44 = vector.broadcast %cst_18 : f32 to vector<16x32xf32>
    %45 = arith.mulf %44, %26 : vector<16x32xf32>
    %cst_19 = arith.constant 0.707106769 : f32
    %46 = vector.broadcast %cst_19 : f32 to vector<16x32xf32>
    %47 = arith.mulf %26, %46 : vector<16x32xf32>
    %cst_20 = arith.constant -3.8325069 : f32
    %cst_21 = arith.constant 3.8325069 : f32
    %48 = vector.broadcast %cst_20 : f32 to vector<16x32xf32>
    %49 = arith.maximumf %48, %47 : vector<16x32xf32>
    %50 = vector.broadcast %cst_21 : f32 to vector<16x32xf32>
    %51 = arith.minimumf %50, %49 : vector<16x32xf32>
    %52 = arith.mulf %51, %51 : vector<16x32xf32>
    %cst_22 = arith.constant -2.72614237E-10 : f32
    %53 = vector.broadcast %cst_22 : f32 to vector<16x32xf32>
    %54 = arith.mulf %53, %52 : vector<16x32xf32>
    %cst_23 = arith.constant 2.77068146E-8 : f32
    %55 = vector.broadcast %cst_23 : f32 to vector<16x32xf32>
    %56 = arith.addf %54, %55 : vector<16x32xf32>
    %57 = arith.mulf %56, %52 : vector<16x32xf32>
    %cst_24 = arith.constant -2.10102394E-6 : f32
    %58 = vector.broadcast %cst_24 : f32 to vector<16x32xf32>
    %59 = arith.addf %57, %58 : vector<16x32xf32>
    %60 = arith.mulf %59, %52 : vector<16x32xf32>
    %cst_25 = arith.constant -5.69250624E-5 : f32
    %61 = vector.broadcast %cst_25 : f32 to vector<16x32xf32>
    %62 = arith.addf %60, %61 : vector<16x32xf32>
    %63 = arith.mulf %62, %52 : vector<16x32xf32>
    %cst_26 = arith.constant -7.34990637E-4 : f32
    %64 = vector.broadcast %cst_26 : f32 to vector<16x32xf32>
    %65 = arith.addf %63, %64 : vector<16x32xf32>
    %66 = arith.mulf %65, %52 : vector<16x32xf32>
    %cst_27 = arith.constant -2.954600e-03 : f32
    %67 = vector.broadcast %cst_27 : f32 to vector<16x32xf32>
    %68 = arith.addf %66, %67 : vector<16x32xf32>
    %69 = arith.mulf %68, %52 : vector<16x32xf32>
    %cst_28 = arith.constant -0.0160960332 : f32
    %70 = vector.broadcast %cst_28 : f32 to vector<16x32xf32>
    %71 = arith.addf %69, %70 : vector<16x32xf32>
    %72 = arith.mulf %71, %51 : vector<16x32xf32>
    %cst_29 = arith.constant -1.45660715E-5 : f32
    %73 = vector.broadcast %cst_29 : f32 to vector<16x32xf32>
    %74 = arith.mulf %73, %52 : vector<16x32xf32>
    %cst_30 = arith.constant -2.13374049E-4 : f32
    %75 = vector.broadcast %cst_30 : f32 to vector<16x32xf32>
    %76 = arith.addf %74, %75 : vector<16x32xf32>
    %77 = arith.mulf %76, %52 : vector<16x32xf32>
    %cst_31 = arith.constant -0.00168282702 : f32
    %78 = vector.broadcast %cst_31 : f32 to vector<16x32xf32>
    %79 = arith.addf %77, %78 : vector<16x32xf32>
    %80 = arith.mulf %79, %52 : vector<16x32xf32>
    %cst_32 = arith.constant -0.00737332925 : f32
    %81 = vector.broadcast %cst_32 : f32 to vector<16x32xf32>
    %82 = arith.addf %80, %81 : vector<16x32xf32>
    %83 = arith.mulf %82, %52 : vector<16x32xf32>
    %cst_33 = arith.constant -0.0142647391 : f32
    %84 = vector.broadcast %cst_33 : f32 to vector<16x32xf32>
    %85 = arith.addf %83, %84 : vector<16x32xf32>
    %86 = arith.divf %72, %85 : vector<16x32xf32>
    %cst_34 = arith.constant 1.000000e+00 : f32
    %87 = vector.broadcast %cst_34 : f32 to vector<16x32xf32>
    %88 = arith.addf %87, %86 : vector<16x32xf32>
    %89 = arith.mulf %45, %88 : vector<16x32xf32>
    %c0_35 = arith.constant 0 : index
    %c0_36 = arith.constant 0 : index
    %c0_37 = arith.constant 0 : index
    %90 = vector.load %arg5[%c0_35, %c0_36, %c0_37] : memref<4x96x32xf32, #tpu.memory_space<vmem>>, vector<1x96x32xf32>
    %91 = vector.shape_cast %90 : vector<1x96x32xf32> to vector<96x32xf32>
    %c0_38 = arith.constant 0 : index
    %c0_39 = arith.constant 0 : index
    %c0_40 = arith.constant 0 : index
    %92 = vector.load %arg6[%c0_38, %c0_39, %c0_40] : memref<4x1x32xf32, #tpu.memory_space<vmem>>, vector<1x1x32xf32>
    %93 = vector.shape_cast %92 : vector<1x1x32xf32> to vector<1x32xf32>
    %c1_i32_41 = arith.constant 1 : i32
    %94 = tpu.dynamic_rotate %89 by %c1_i32_41 dim 0 : vector<16x32xf32>, i32 -> vector<16x32xf32>
    %c15_i32 = arith.constant 15 : i32
    %95 = tpu.dynamic_rotate %89 by %c15_i32 dim 0 : vector<16x32xf32>, i32 -> vector<16x32xf32>
    %c1_i32_42 = arith.constant 1 : i32
    %96 = vector.broadcast %c1_i32_42 : i32 to vector<16x1xi32>
    %97 = arith.cmpi sge, %43, %96 : vector<16x1xi32>
    %cst_43 = arith.constant 0.000000e+00 : f32
    %98 = vector.shape_cast %97 : vector<16x1xi1> to vector<16x1xi1>
    %99 = vector.broadcast %98 : vector<16x1xi1> to vector<16x32xi1>
    %100 = vector.broadcast %cst_43 : f32 to vector<16x32xf32>
    %101 = arith.select %99, %94, %100 : vector<16x32xi1>, vector<16x32xf32>
    %c7_i32 = arith.constant 7 : i32
    %102 = vector.broadcast %c7_i32 : i32 to vector<16x1xi32>
    %103 = arith.cmpi slt, %43, %102 : vector<16x1xi32>
    %cst_44 = arith.constant 0.000000e+00 : f32
    %104 = vector.shape_cast %103 : vector<16x1xi1> to vector<16x1xi1>
    %105 = vector.broadcast %104 : vector<16x1xi1> to vector<16x32xi1>
    %106 = vector.broadcast %cst_44 : f32 to vector<16x32xf32>
    %107 = arith.select %105, %95, %106 : vector<16x32xi1>, vector<16x32xf32>
    %108 = tpu.concatenate %101, %89, %107 in 1 : vector<16x32xf32>, vector<16x32xf32>, vector<16x32xf32> -> vector<16x96xf32>
    %cst_45 = arith.constant dense<0.000000e+00> : vector<16x32xf32>
    %109 = tpu.matmul %108, %91, %cst_45 {dimension_numbers = #tpu.dot_dimension_numbers<[1], [0], [0], [1], [0, 0, 1, 1], [], []>} : vector<16x96xf32>, vector<96x32xf32>, vector<16x32xf32> -> vector<16x32xf32>
    %110 = vector.broadcast %93 : vector<1x32xf32> to vector<16x32xf32>
    %111 = arith.addf %109, %110 : vector<16x32xf32>
    %cst_46 = arith.constant 5.000000e-01 : f32
    %112 = vector.broadcast %cst_46 : f32 to vector<16x32xf32>
    %113 = arith.mulf %112, %111 : vector<16x32xf32>
    %cst_47 = arith.constant 0.707106769 : f32
    %114 = vector.broadcast %cst_47 : f32 to vector<16x32xf32>
    %115 = arith.mulf %111, %114 : vector<16x32xf32>
    %cst_48 = arith.constant -3.8325069 : f32
    %cst_49 = arith.constant 3.8325069 : f32
    %116 = vector.broadcast %cst_48 : f32 to vector<16x32xf32>
    %117 = arith.maximumf %116, %115 : vector<16x32xf32>
    %118 = vector.broadcast %cst_49 : f32 to vector<16x32xf32>
    %119 = arith.minimumf %118, %117 : vector<16x32xf32>
    %120 = arith.mulf %119, %119 : vector<16x32xf32>
    %cst_50 = arith.constant -2.72614237E-10 : f32
    %121 = vector.broadcast %cst_50 : f32 to vector<16x32xf32>
    %122 = arith.mulf %121, %120 : vector<16x32xf32>
    %cst_51 = arith.constant 2.77068146E-8 : f32
    %123 = vector.broadcast %cst_51 : f32 to vector<16x32xf32>
    %124 = arith.addf %122, %123 : vector<16x32xf32>
    %125 = arith.mulf %124, %120 : vector<16x32xf32>
    %cst_52 = arith.constant -2.10102394E-6 : f32
    %126 = vector.broadcast %cst_52 : f32 to vector<16x32xf32>
    %127 = arith.addf %125, %126 : vector<16x32xf32>
    %128 = arith.mulf %127, %120 : vector<16x32xf32>
    %cst_53 = arith.constant -5.69250624E-5 : f32
    %129 = vector.broadcast %cst_53 : f32 to vector<16x32xf32>
    %130 = arith.addf %128, %129 : vector<16x32xf32>
    %131 = arith.mulf %130, %120 : vector<16x32xf32>
    %cst_54 = arith.constant -7.34990637E-4 : f32
    %132 = vector.broadcast %cst_54 : f32 to vector<16x32xf32>
    %133 = arith.addf %131, %132 : vector<16x32xf32>
    %134 = arith.mulf %133, %120 : vector<16x32xf32>
    %cst_55 = arith.constant -2.954600e-03 : f32
    %135 = vector.broadcast %cst_55 : f32 to vector<16x32xf32>
    %136 = arith.addf %134, %135 : vector<16x32xf32>
    %137 = arith.mulf %136, %120 : vector<16x32xf32>
    %cst_56 = arith.constant -0.0160960332 : f32
    %138 = vector.broadcast %cst_56 : f32 to vector<16x32xf32>
    %139 = arith.addf %137, %138 : vector<16x32xf32>
    %140 = arith.mulf %139, %119 : vector<16x32xf32>
    %cst_57 = arith.constant -1.45660715E-5 : f32
    %141 = vector.broadcast %cst_57 : f32 to vector<16x32xf32>
    %142 = arith.mulf %141, %120 : vector<16x32xf32>
    %cst_58 = arith.constant -2.13374049E-4 : f32
    %143 = vector.broadcast %cst_58 : f32 to vector<16x32xf32>
    %144 = arith.addf %142, %143 : vector<16x32xf32>
    %145 = arith.mulf %144, %120 : vector<16x32xf32>
    %cst_59 = arith.constant -0.00168282702 : f32
    %146 = vector.broadcast %cst_59 : f32 to vector<16x32xf32>
    %147 = arith.addf %145, %146 : vector<16x32xf32>
    %148 = arith.mulf %147, %120 : vector<16x32xf32>
    %cst_60 = arith.constant -0.00737332925 : f32
    %149 = vector.broadcast %cst_60 : f32 to vector<16x32xf32>
    %150 = arith.addf %148, %149 : vector<16x32xf32>
    %151 = arith.mulf %150, %120 : vector<16x32xf32>
    %cst_61 = arith.constant -0.0142647391 : f32
    %152 = vector.broadcast %cst_61 : f32 to vector<16x32xf32>
    %153 = arith.addf %151, %152 : vector<16x32xf32>
    %154 = arith.divf %140, %153 : vector<16x32xf32>
    %cst_62 = arith.constant 1.000000e+00 : f32
    %155 = vector.broadcast %cst_62 : f32 to vector<16x32xf32>
    %156 = arith.addf %155, %154 : vector<16x32xf32>
    %157 = arith.mulf %113, %156 : vector<16x32xf32>
    %c0_63 = arith.constant 0 : index
    %c0_64 = arith.constant 0 : index
    %c0_65 = arith.constant 0 : index
    %158 = vector.load %arg7[%c0_63, %c0_64, %c0_65] : memref<4x96x32xf32, #tpu.memory_space<vmem>>, vector<1x96x32xf32>
    %159 = vector.shape_cast %158 : vector<1x96x32xf32> to vector<96x32xf32>
    %c0_66 = arith.constant 0 : index
    %c0_67 = arith.constant 0 : index
    %c0_68 = arith.constant 0 : index
    %160 = vector.load %arg8[%c0_66, %c0_67, %c0_68] : memref<4x1x32xf32, #tpu.memory_space<vmem>>, vector<1x1x32xf32>
    %161 = vector.shape_cast %160 : vector<1x1x32xf32> to vector<1x32xf32>
    %c1_i32_69 = arith.constant 1 : i32
    %162 = tpu.dynamic_rotate %157 by %c1_i32_69 dim 0 : vector<16x32xf32>, i32 -> vector<16x32xf32>
    %c15_i32_70 = arith.constant 15 : i32
    %163 = tpu.dynamic_rotate %157 by %c15_i32_70 dim 0 : vector<16x32xf32>, i32 -> vector<16x32xf32>
    %c1_i32_71 = arith.constant 1 : i32
    %164 = vector.broadcast %c1_i32_71 : i32 to vector<16x1xi32>
    %165 = arith.cmpi sge, %43, %164 : vector<16x1xi32>
    %cst_72 = arith.constant 0.000000e+00 : f32
    %166 = vector.shape_cast %165 : vector<16x1xi1> to vector<16x1xi1>
    %167 = vector.broadcast %166 : vector<16x1xi1> to vector<16x32xi1>
    %168 = vector.broadcast %cst_72 : f32 to vector<16x32xf32>
    %169 = arith.select %167, %162, %168 : vector<16x32xi1>, vector<16x32xf32>
    %c7_i32_73 = arith.constant 7 : i32
    %170 = vector.broadcast %c7_i32_73 : i32 to vector<16x1xi32>
    %171 = arith.cmpi slt, %43, %170 : vector<16x1xi32>
    %cst_74 = arith.constant 0.000000e+00 : f32
    %172 = vector.shape_cast %171 : vector<16x1xi1> to vector<16x1xi1>
    %173 = vector.broadcast %172 : vector<16x1xi1> to vector<16x32xi1>
    %174 = vector.broadcast %cst_74 : f32 to vector<16x32xf32>
    %175 = arith.select %173, %163, %174 : vector<16x32xi1>, vector<16x32xf32>
    %176 = tpu.concatenate %169, %157, %175 in 1 : vector<16x32xf32>, vector<16x32xf32>, vector<16x32xf32> -> vector<16x96xf32>
    %cst_75 = arith.constant dense<0.000000e+00> : vector<16x32xf32>
    %177 = tpu.matmul %176, %159, %cst_75 {dimension_numbers = #tpu.dot_dimension_numbers<[1], [0], [0], [1], [0, 0, 1, 1], [], []>} : vector<16x96xf32>, vector<96x32xf32>, vector<16x32xf32> -> vector<16x32xf32>
    %178 = vector.broadcast %161 : vector<1x32xf32> to vector<16x32xf32>
    %179 = arith.addf %177, %178 : vector<16x32xf32>
    %180 = arith.addf %179, %26 : vector<16x32xf32>
    %cst_76 = arith.constant 5.000000e-01 : f32
    %181 = vector.broadcast %cst_76 : f32 to vector<16x32xf32>
    %182 = arith.mulf %181, %180 : vector<16x32xf32>
    %cst_77 = arith.constant 0.707106769 : f32
    %183 = vector.broadcast %cst_77 : f32 to vector<16x32xf32>
    %184 = arith.mulf %180, %183 : vector<16x32xf32>
    %cst_78 = arith.constant -3.8325069 : f32
    %cst_79 = arith.constant 3.8325069 : f32
    %185 = vector.broadcast %cst_78 : f32 to vector<16x32xf32>
    %186 = arith.maximumf %185, %184 : vector<16x32xf32>
    %187 = vector.broadcast %cst_79 : f32 to vector<16x32xf32>
    %188 = arith.minimumf %187, %186 : vector<16x32xf32>
    %189 = arith.mulf %188, %188 : vector<16x32xf32>
    %cst_80 = arith.constant -2.72614237E-10 : f32
    %190 = vector.broadcast %cst_80 : f32 to vector<16x32xf32>
    %191 = arith.mulf %190, %189 : vector<16x32xf32>
    %cst_81 = arith.constant 2.77068146E-8 : f32
    %192 = vector.broadcast %cst_81 : f32 to vector<16x32xf32>
    %193 = arith.addf %191, %192 : vector<16x32xf32>
    %194 = arith.mulf %193, %189 : vector<16x32xf32>
    %cst_82 = arith.constant -2.10102394E-6 : f32
    %195 = vector.broadcast %cst_82 : f32 to vector<16x32xf32>
    %196 = arith.addf %194, %195 : vector<16x32xf32>
    %197 = arith.mulf %196, %189 : vector<16x32xf32>
    %cst_83 = arith.constant -5.69250624E-5 : f32
    %198 = vector.broadcast %cst_83 : f32 to vector<16x32xf32>
    %199 = arith.addf %197, %198 : vector<16x32xf32>
    %200 = arith.mulf %199, %189 : vector<16x32xf32>
    %cst_84 = arith.constant -7.34990637E-4 : f32
    %201 = vector.broadcast %cst_84 : f32 to vector<16x32xf32>
    %202 = arith.addf %200, %201 : vector<16x32xf32>
    %203 = arith.mulf %202, %189 : vector<16x32xf32>
    %cst_85 = arith.constant -2.954600e-03 : f32
    %204 = vector.broadcast %cst_85 : f32 to vector<16x32xf32>
    %205 = arith.addf %203, %204 : vector<16x32xf32>
    %206 = arith.mulf %205, %189 : vector<16x32xf32>
    %cst_86 = arith.constant -0.0160960332 : f32
    %207 = vector.broadcast %cst_86 : f32 to vector<16x32xf32>
    %208 = arith.addf %206, %207 : vector<16x32xf32>
    %209 = arith.mulf %208, %188 : vector<16x32xf32>
    %cst_87 = arith.constant -1.45660715E-5 : f32
    %210 = vector.broadcast %cst_87 : f32 to vector<16x32xf32>
    %211 = arith.mulf %210, %189 : vector<16x32xf32>
    %cst_88 = arith.constant -2.13374049E-4 : f32
    %212 = vector.broadcast %cst_88 : f32 to vector<16x32xf32>
    %213 = arith.addf %211, %212 : vector<16x32xf32>
    %214 = arith.mulf %213, %189 : vector<16x32xf32>
    %cst_89 = arith.constant -0.00168282702 : f32
    %215 = vector.broadcast %cst_89 : f32 to vector<16x32xf32>
    %216 = arith.addf %214, %215 : vector<16x32xf32>
    %217 = arith.mulf %216, %189 : vector<16x32xf32>
    %cst_90 = arith.constant -0.00737332925 : f32
    %218 = vector.broadcast %cst_90 : f32 to vector<16x32xf32>
    %219 = arith.addf %217, %218 : vector<16x32xf32>
    %220 = arith.mulf %219, %189 : vector<16x32xf32>
    %cst_91 = arith.constant -0.0142647391 : f32
    %221 = vector.broadcast %cst_91 : f32 to vector<16x32xf32>
    %222 = arith.addf %220, %221 : vector<16x32xf32>
    %223 = arith.divf %209, %222 : vector<16x32xf32>
    %cst_92 = arith.constant 1.000000e+00 : f32
    %224 = vector.broadcast %cst_92 : f32 to vector<16x32xf32>
    %225 = arith.addf %224, %223 : vector<16x32xf32>
    %226 = arith.mulf %182, %225 : vector<16x32xf32>
    %c1 = arith.constant 1 : index
    %c0_93 = arith.constant 0 : index
    %c0_94 = arith.constant 0 : index
    %227 = vector.load %arg5[%c1, %c0_93, %c0_94] : memref<4x96x32xf32, #tpu.memory_space<vmem>>, vector<1x96x32xf32>
    %228 = vector.shape_cast %227 : vector<1x96x32xf32> to vector<96x32xf32>
    %c1_95 = arith.constant 1 : index
    %c0_96 = arith.constant 0 : index
    %c0_97 = arith.constant 0 : index
    %229 = vector.load %arg6[%c1_95, %c0_96, %c0_97] : memref<4x1x32xf32, #tpu.memory_space<vmem>>, vector<1x1x32xf32>
    %230 = vector.shape_cast %229 : vector<1x1x32xf32> to vector<1x32xf32>
    %c2_i32 = arith.constant 2 : i32
    %231 = tpu.dynamic_rotate %226 by %c2_i32 dim 0 : vector<16x32xf32>, i32 -> vector<16x32xf32>
    %c14_i32 = arith.constant 14 : i32
    %232 = tpu.dynamic_rotate %226 by %c14_i32 dim 0 : vector<16x32xf32>, i32 -> vector<16x32xf32>
    %c2_i32_98 = arith.constant 2 : i32
    %233 = vector.broadcast %c2_i32_98 : i32 to vector<16x1xi32>
    %234 = arith.cmpi sge, %43, %233 : vector<16x1xi32>
    %cst_99 = arith.constant 0.000000e+00 : f32
    %235 = vector.shape_cast %234 : vector<16x1xi1> to vector<16x1xi1>
    %236 = vector.broadcast %235 : vector<16x1xi1> to vector<16x32xi1>
    %237 = vector.broadcast %cst_99 : f32 to vector<16x32xf32>
    %238 = arith.select %236, %231, %237 : vector<16x32xi1>, vector<16x32xf32>
    %c6_i32 = arith.constant 6 : i32
    %239 = vector.broadcast %c6_i32 : i32 to vector<16x1xi32>
    %240 = arith.cmpi slt, %43, %239 : vector<16x1xi32>
    %cst_100 = arith.constant 0.000000e+00 : f32
    %241 = vector.shape_cast %240 : vector<16x1xi1> to vector<16x1xi1>
    %242 = vector.broadcast %241 : vector<16x1xi1> to vector<16x32xi1>
    %243 = vector.broadcast %cst_100 : f32 to vector<16x32xf32>
    %244 = arith.select %242, %232, %243 : vector<16x32xi1>, vector<16x32xf32>
    %245 = tpu.concatenate %238, %226, %244 in 1 : vector<16x32xf32>, vector<16x32xf32>, vector<16x32xf32> -> vector<16x96xf32>
    %cst_101 = arith.constant dense<0.000000e+00> : vector<16x32xf32>
    %246 = tpu.matmul %245, %228, %cst_101 {dimension_numbers = #tpu.dot_dimension_numbers<[1], [0], [0], [1], [0, 0, 1, 1], [], []>} : vector<16x96xf32>, vector<96x32xf32>, vector<16x32xf32> -> vector<16x32xf32>
    %247 = vector.broadcast %230 : vector<1x32xf32> to vector<16x32xf32>
    %248 = arith.addf %246, %247 : vector<16x32xf32>
    %cst_102 = arith.constant 5.000000e-01 : f32
    %249 = vector.broadcast %cst_102 : f32 to vector<16x32xf32>
    %250 = arith.mulf %249, %248 : vector<16x32xf32>
    %cst_103 = arith.constant 0.707106769 : f32
    %251 = vector.broadcast %cst_103 : f32 to vector<16x32xf32>
    %252 = arith.mulf %248, %251 : vector<16x32xf32>
    %cst_104 = arith.constant -3.8325069 : f32
    %cst_105 = arith.constant 3.8325069 : f32
    %253 = vector.broadcast %cst_104 : f32 to vector<16x32xf32>
    %254 = arith.maximumf %253, %252 : vector<16x32xf32>
    %255 = vector.broadcast %cst_105 : f32 to vector<16x32xf32>
    %256 = arith.minimumf %255, %254 : vector<16x32xf32>
    %257 = arith.mulf %256, %256 : vector<16x32xf32>
    %cst_106 = arith.constant -2.72614237E-10 : f32
    %258 = vector.broadcast %cst_106 : f32 to vector<16x32xf32>
    %259 = arith.mulf %258, %257 : vector<16x32xf32>
    %cst_107 = arith.constant 2.77068146E-8 : f32
    %260 = vector.broadcast %cst_107 : f32 to vector<16x32xf32>
    %261 = arith.addf %259, %260 : vector<16x32xf32>
    %262 = arith.mulf %261, %257 : vector<16x32xf32>
    %cst_108 = arith.constant -2.10102394E-6 : f32
    %263 = vector.broadcast %cst_108 : f32 to vector<16x32xf32>
    %264 = arith.addf %262, %263 : vector<16x32xf32>
    %265 = arith.mulf %264, %257 : vector<16x32xf32>
    %cst_109 = arith.constant -5.69250624E-5 : f32
    %266 = vector.broadcast %cst_109 : f32 to vector<16x32xf32>
    %267 = arith.addf %265, %266 : vector<16x32xf32>
    %268 = arith.mulf %267, %257 : vector<16x32xf32>
    %cst_110 = arith.constant -7.34990637E-4 : f32
    %269 = vector.broadcast %cst_110 : f32 to vector<16x32xf32>
    %270 = arith.addf %268, %269 : vector<16x32xf32>
    %271 = arith.mulf %270, %257 : vector<16x32xf32>
    %cst_111 = arith.constant -2.954600e-03 : f32
    %272 = vector.broadcast %cst_111 : f32 to vector<16x32xf32>
    %273 = arith.addf %271, %272 : vector<16x32xf32>
    %274 = arith.mulf %273, %257 : vector<16x32xf32>
    %cst_112 = arith.constant -0.0160960332 : f32
    %275 = vector.broadcast %cst_112 : f32 to vector<16x32xf32>
    %276 = arith.addf %274, %275 : vector<16x32xf32>
    %277 = arith.mulf %276, %256 : vector<16x32xf32>
    %cst_113 = arith.constant -1.45660715E-5 : f32
    %278 = vector.broadcast %cst_113 : f32 to vector<16x32xf32>
    %279 = arith.mulf %278, %257 : vector<16x32xf32>
    %cst_114 = arith.constant -2.13374049E-4 : f32
    %280 = vector.broadcast %cst_114 : f32 to vector<16x32xf32>
    %281 = arith.addf %279, %280 : vector<16x32xf32>
    %282 = arith.mulf %281, %257 : vector<16x32xf32>
    %cst_115 = arith.constant -0.00168282702 : f32
    %283 = vector.broadcast %cst_115 : f32 to vector<16x32xf32>
    %284 = arith.addf %282, %283 : vector<16x32xf32>
    %285 = arith.mulf %284, %257 : vector<16x32xf32>
    %cst_116 = arith.constant -0.00737332925 : f32
    %286 = vector.broadcast %cst_116 : f32 to vector<16x32xf32>
    %287 = arith.addf %285, %286 : vector<16x32xf32>
    %288 = arith.mulf %287, %257 : vector<16x32xf32>
    %cst_117 = arith.constant -0.0142647391 : f32
    %289 = vector.broadcast %cst_117 : f32 to vector<16x32xf32>
    %290 = arith.addf %288, %289 : vector<16x32xf32>
    %291 = arith.divf %277, %290 : vector<16x32xf32>
    %cst_118 = arith.constant 1.000000e+00 : f32
    %292 = vector.broadcast %cst_118 : f32 to vector<16x32xf32>
    %293 = arith.addf %292, %291 : vector<16x32xf32>
    %294 = arith.mulf %250, %293 : vector<16x32xf32>
    %c1_119 = arith.constant 1 : index
    %c0_120 = arith.constant 0 : index
    %c0_121 = arith.constant 0 : index
    %295 = vector.load %arg7[%c1_119, %c0_120, %c0_121] : memref<4x96x32xf32, #tpu.memory_space<vmem>>, vector<1x96x32xf32>
    %296 = vector.shape_cast %295 : vector<1x96x32xf32> to vector<96x32xf32>
    %c1_122 = arith.constant 1 : index
    %c0_123 = arith.constant 0 : index
    %c0_124 = arith.constant 0 : index
    %297 = vector.load %arg8[%c1_122, %c0_123, %c0_124] : memref<4x1x32xf32, #tpu.memory_space<vmem>>, vector<1x1x32xf32>
    %298 = vector.shape_cast %297 : vector<1x1x32xf32> to vector<1x32xf32>
    %c2_i32_125 = arith.constant 2 : i32
    %299 = tpu.dynamic_rotate %294 by %c2_i32_125 dim 0 : vector<16x32xf32>, i32 -> vector<16x32xf32>
    %c14_i32_126 = arith.constant 14 : i32
    %300 = tpu.dynamic_rotate %294 by %c14_i32_126 dim 0 : vector<16x32xf32>, i32 -> vector<16x32xf32>
    %c2_i32_127 = arith.constant 2 : i32
    %301 = vector.broadcast %c2_i32_127 : i32 to vector<16x1xi32>
    %302 = arith.cmpi sge, %43, %301 : vector<16x1xi32>
    %cst_128 = arith.constant 0.000000e+00 : f32
    %303 = vector.shape_cast %302 : vector<16x1xi1> to vector<16x1xi1>
    %304 = vector.broadcast %303 : vector<16x1xi1> to vector<16x32xi1>
    %305 = vector.broadcast %cst_128 : f32 to vector<16x32xf32>
    %306 = arith.select %304, %299, %305 : vector<16x32xi1>, vector<16x32xf32>
    %c6_i32_129 = arith.constant 6 : i32
    %307 = vector.broadcast %c6_i32_129 : i32 to vector<16x1xi32>
    %308 = arith.cmpi slt, %43, %307 : vector<16x1xi32>
    %cst_130 = arith.constant 0.000000e+00 : f32
    %309 = vector.shape_cast %308 : vector<16x1xi1> to vector<16x1xi1>
    %310 = vector.broadcast %309 : vector<16x1xi1> to vector<16x32xi1>
    %311 = vector.broadcast %cst_130 : f32 to vector<16x32xf32>
    %312 = arith.select %310, %300, %311 : vector<16x32xi1>, vector<16x32xf32>
    %313 = tpu.concatenate %306, %294, %312 in 1 : vector<16x32xf32>, vector<16x32xf32>, vector<16x32xf32> -> vector<16x96xf32>
    %cst_131 = arith.constant dense<0.000000e+00> : vector<16x32xf32>
    %314 = tpu.matmul %313, %296, %cst_131 {dimension_numbers = #tpu.dot_dimension_numbers<[1], [0], [0], [1], [0, 0, 1, 1], [], []>} : vector<16x96xf32>, vector<96x32xf32>, vector<16x32xf32> -> vector<16x32xf32>
    %315 = vector.broadcast %298 : vector<1x32xf32> to vector<16x32xf32>
    %316 = arith.addf %314, %315 : vector<16x32xf32>
    %317 = arith.addf %316, %180 : vector<16x32xf32>
    %cst_132 = arith.constant 5.000000e-01 : f32
    %318 = vector.broadcast %cst_132 : f32 to vector<16x32xf32>
    %319 = arith.mulf %318, %317 : vector<16x32xf32>
    %cst_133 = arith.constant 0.707106769 : f32
    %320 = vector.broadcast %cst_133 : f32 to vector<16x32xf32>
    %321 = arith.mulf %317, %320 : vector<16x32xf32>
    %cst_134 = arith.constant -3.8325069 : f32
    %cst_135 = arith.constant 3.8325069 : f32
    %322 = vector.broadcast %cst_134 : f32 to vector<16x32xf32>
    %323 = arith.maximumf %322, %321 : vector<16x32xf32>
    %324 = vector.broadcast %cst_135 : f32 to vector<16x32xf32>
    %325 = arith.minimumf %324, %323 : vector<16x32xf32>
    %326 = arith.mulf %325, %325 : vector<16x32xf32>
    %cst_136 = arith.constant -2.72614237E-10 : f32
    %327 = vector.broadcast %cst_136 : f32 to vector<16x32xf32>
    %328 = arith.mulf %327, %326 : vector<16x32xf32>
    %cst_137 = arith.constant 2.77068146E-8 : f32
    %329 = vector.broadcast %cst_137 : f32 to vector<16x32xf32>
    %330 = arith.addf %328, %329 : vector<16x32xf32>
    %331 = arith.mulf %330, %326 : vector<16x32xf32>
    %cst_138 = arith.constant -2.10102394E-6 : f32
    %332 = vector.broadcast %cst_138 : f32 to vector<16x32xf32>
    %333 = arith.addf %331, %332 : vector<16x32xf32>
    %334 = arith.mulf %333, %326 : vector<16x32xf32>
    %cst_139 = arith.constant -5.69250624E-5 : f32
    %335 = vector.broadcast %cst_139 : f32 to vector<16x32xf32>
    %336 = arith.addf %334, %335 : vector<16x32xf32>
    %337 = arith.mulf %336, %326 : vector<16x32xf32>
    %cst_140 = arith.constant -7.34990637E-4 : f32
    %338 = vector.broadcast %cst_140 : f32 to vector<16x32xf32>
    %339 = arith.addf %337, %338 : vector<16x32xf32>
    %340 = arith.mulf %339, %326 : vector<16x32xf32>
    %cst_141 = arith.constant -2.954600e-03 : f32
    %341 = vector.broadcast %cst_141 : f32 to vector<16x32xf32>
    %342 = arith.addf %340, %341 : vector<16x32xf32>
    %343 = arith.mulf %342, %326 : vector<16x32xf32>
    %cst_142 = arith.constant -0.0160960332 : f32
    %344 = vector.broadcast %cst_142 : f32 to vector<16x32xf32>
    %345 = arith.addf %343, %344 : vector<16x32xf32>
    %346 = arith.mulf %345, %325 : vector<16x32xf32>
    %cst_143 = arith.constant -1.45660715E-5 : f32
    %347 = vector.broadcast %cst_143 : f32 to vector<16x32xf32>
    %348 = arith.mulf %347, %326 : vector<16x32xf32>
    %cst_144 = arith.constant -2.13374049E-4 : f32
    %349 = vector.broadcast %cst_144 : f32 to vector<16x32xf32>
    %350 = arith.addf %348, %349 : vector<16x32xf32>
    %351 = arith.mulf %350, %326 : vector<16x32xf32>
    %cst_145 = arith.constant -0.00168282702 : f32
    %352 = vector.broadcast %cst_145 : f32 to vector<16x32xf32>
    %353 = arith.addf %351, %352 : vector<16x32xf32>
    %354 = arith.mulf %353, %326 : vector<16x32xf32>
    %cst_146 = arith.constant -0.00737332925 : f32
    %355 = vector.broadcast %cst_146 : f32 to vector<16x32xf32>
    %356 = arith.addf %354, %355 : vector<16x32xf32>
    %357 = arith.mulf %356, %326 : vector<16x32xf32>
    %cst_147 = arith.constant -0.0142647391 : f32
    %358 = vector.broadcast %cst_147 : f32 to vector<16x32xf32>
    %359 = arith.addf %357, %358 : vector<16x32xf32>
    %360 = arith.divf %346, %359 : vector<16x32xf32>
    %cst_148 = arith.constant 1.000000e+00 : f32
    %361 = vector.broadcast %cst_148 : f32 to vector<16x32xf32>
    %362 = arith.addf %361, %360 : vector<16x32xf32>
    %363 = arith.mulf %319, %362 : vector<16x32xf32>
    %c2 = arith.constant 2 : index
    %c0_149 = arith.constant 0 : index
    %c0_150 = arith.constant 0 : index
    %364 = vector.load %arg5[%c2, %c0_149, %c0_150] : memref<4x96x32xf32, #tpu.memory_space<vmem>>, vector<1x96x32xf32>
    %365 = vector.shape_cast %364 : vector<1x96x32xf32> to vector<96x32xf32>
    %c2_151 = arith.constant 2 : index
    %c0_152 = arith.constant 0 : index
    %c0_153 = arith.constant 0 : index
    %366 = vector.load %arg6[%c2_151, %c0_152, %c0_153] : memref<4x1x32xf32, #tpu.memory_space<vmem>>, vector<1x1x32xf32>
    %367 = vector.shape_cast %366 : vector<1x1x32xf32> to vector<1x32xf32>
    %c4_i32 = arith.constant 4 : i32
    %368 = tpu.dynamic_rotate %363 by %c4_i32 dim 0 : vector<16x32xf32>, i32 -> vector<16x32xf32>
    %c12_i32 = arith.constant 12 : i32
    %369 = tpu.dynamic_rotate %363 by %c12_i32 dim 0 : vector<16x32xf32>, i32 -> vector<16x32xf32>
    %c4_i32_154 = arith.constant 4 : i32
    %370 = vector.broadcast %c4_i32_154 : i32 to vector<16x1xi32>
    %371 = arith.cmpi sge, %43, %370 : vector<16x1xi32>
    %cst_155 = arith.constant 0.000000e+00 : f32
    %372 = vector.shape_cast %371 : vector<16x1xi1> to vector<16x1xi1>
    %373 = vector.broadcast %372 : vector<16x1xi1> to vector<16x32xi1>
    %374 = vector.broadcast %cst_155 : f32 to vector<16x32xf32>
    %375 = arith.select %373, %368, %374 : vector<16x32xi1>, vector<16x32xf32>
    %c4_i32_156 = arith.constant 4 : i32
    %376 = vector.broadcast %c4_i32_156 : i32 to vector<16x1xi32>
    %377 = arith.cmpi slt, %43, %376 : vector<16x1xi32>
    %cst_157 = arith.constant 0.000000e+00 : f32
    %378 = vector.shape_cast %377 : vector<16x1xi1> to vector<16x1xi1>
    %379 = vector.broadcast %378 : vector<16x1xi1> to vector<16x32xi1>
    %380 = vector.broadcast %cst_157 : f32 to vector<16x32xf32>
    %381 = arith.select %379, %369, %380 : vector<16x32xi1>, vector<16x32xf32>
    %382 = tpu.concatenate %375, %363, %381 in 1 : vector<16x32xf32>, vector<16x32xf32>, vector<16x32xf32> -> vector<16x96xf32>
    %cst_158 = arith.constant dense<0.000000e+00> : vector<16x32xf32>
    %383 = tpu.matmul %382, %365, %cst_158 {dimension_numbers = #tpu.dot_dimension_numbers<[1], [0], [0], [1], [0, 0, 1, 1], [], []>} : vector<16x96xf32>, vector<96x32xf32>, vector<16x32xf32> -> vector<16x32xf32>
    %384 = vector.broadcast %367 : vector<1x32xf32> to vector<16x32xf32>
    %385 = arith.addf %383, %384 : vector<16x32xf32>
    %cst_159 = arith.constant 5.000000e-01 : f32
    %386 = vector.broadcast %cst_159 : f32 to vector<16x32xf32>
    %387 = arith.mulf %386, %385 : vector<16x32xf32>
    %cst_160 = arith.constant 0.707106769 : f32
    %388 = vector.broadcast %cst_160 : f32 to vector<16x32xf32>
    %389 = arith.mulf %385, %388 : vector<16x32xf32>
    %cst_161 = arith.constant -3.8325069 : f32
    %cst_162 = arith.constant 3.8325069 : f32
    %390 = vector.broadcast %cst_161 : f32 to vector<16x32xf32>
    %391 = arith.maximumf %390, %389 : vector<16x32xf32>
    %392 = vector.broadcast %cst_162 : f32 to vector<16x32xf32>
    %393 = arith.minimumf %392, %391 : vector<16x32xf32>
    %394 = arith.mulf %393, %393 : vector<16x32xf32>
    %cst_163 = arith.constant -2.72614237E-10 : f32
    %395 = vector.broadcast %cst_163 : f32 to vector<16x32xf32>
    %396 = arith.mulf %395, %394 : vector<16x32xf32>
    %cst_164 = arith.constant 2.77068146E-8 : f32
    %397 = vector.broadcast %cst_164 : f32 to vector<16x32xf32>
    %398 = arith.addf %396, %397 : vector<16x32xf32>
    %399 = arith.mulf %398, %394 : vector<16x32xf32>
    %cst_165 = arith.constant -2.10102394E-6 : f32
    %400 = vector.broadcast %cst_165 : f32 to vector<16x32xf32>
    %401 = arith.addf %399, %400 : vector<16x32xf32>
    %402 = arith.mulf %401, %394 : vector<16x32xf32>
    %cst_166 = arith.constant -5.69250624E-5 : f32
    %403 = vector.broadcast %cst_166 : f32 to vector<16x32xf32>
    %404 = arith.addf %402, %403 : vector<16x32xf32>
    %405 = arith.mulf %404, %394 : vector<16x32xf32>
    %cst_167 = arith.constant -7.34990637E-4 : f32
    %406 = vector.broadcast %cst_167 : f32 to vector<16x32xf32>
    %407 = arith.addf %405, %406 : vector<16x32xf32>
    %408 = arith.mulf %407, %394 : vector<16x32xf32>
    %cst_168 = arith.constant -2.954600e-03 : f32
    %409 = vector.broadcast %cst_168 : f32 to vector<16x32xf32>
    %410 = arith.addf %408, %409 : vector<16x32xf32>
    %411 = arith.mulf %410, %394 : vector<16x32xf32>
    %cst_169 = arith.constant -0.0160960332 : f32
    %412 = vector.broadcast %cst_169 : f32 to vector<16x32xf32>
    %413 = arith.addf %411, %412 : vector<16x32xf32>
    %414 = arith.mulf %413, %393 : vector<16x32xf32>
    %cst_170 = arith.constant -1.45660715E-5 : f32
    %415 = vector.broadcast %cst_170 : f32 to vector<16x32xf32>
    %416 = arith.mulf %415, %394 : vector<16x32xf32>
    %cst_171 = arith.constant -2.13374049E-4 : f32
    %417 = vector.broadcast %cst_171 : f32 to vector<16x32xf32>
    %418 = arith.addf %416, %417 : vector<16x32xf32>
    %419 = arith.mulf %418, %394 : vector<16x32xf32>
    %cst_172 = arith.constant -0.00168282702 : f32
    %420 = vector.broadcast %cst_172 : f32 to vector<16x32xf32>
    %421 = arith.addf %419, %420 : vector<16x32xf32>
    %422 = arith.mulf %421, %394 : vector<16x32xf32>
    %cst_173 = arith.constant -0.00737332925 : f32
    %423 = vector.broadcast %cst_173 : f32 to vector<16x32xf32>
    %424 = arith.addf %422, %423 : vector<16x32xf32>
    %425 = arith.mulf %424, %394 : vector<16x32xf32>
    %cst_174 = arith.constant -0.0142647391 : f32
    %426 = vector.broadcast %cst_174 : f32 to vector<16x32xf32>
    %427 = arith.addf %425, %426 : vector<16x32xf32>
    %428 = arith.divf %414, %427 : vector<16x32xf32>
    %cst_175 = arith.constant 1.000000e+00 : f32
    %429 = vector.broadcast %cst_175 : f32 to vector<16x32xf32>
    %430 = arith.addf %429, %428 : vector<16x32xf32>
    %431 = arith.mulf %387, %430 : vector<16x32xf32>
    %c2_176 = arith.constant 2 : index
    %c0_177 = arith.constant 0 : index
    %c0_178 = arith.constant 0 : index
    %432 = vector.load %arg7[%c2_176, %c0_177, %c0_178] : memref<4x96x32xf32, #tpu.memory_space<vmem>>, vector<1x96x32xf32>
    %433 = vector.shape_cast %432 : vector<1x96x32xf32> to vector<96x32xf32>
    %c2_179 = arith.constant 2 : index
    %c0_180 = arith.constant 0 : index
    %c0_181 = arith.constant 0 : index
    %434 = vector.load %arg8[%c2_179, %c0_180, %c0_181] : memref<4x1x32xf32, #tpu.memory_space<vmem>>, vector<1x1x32xf32>
    %435 = vector.shape_cast %434 : vector<1x1x32xf32> to vector<1x32xf32>
    %c4_i32_182 = arith.constant 4 : i32
    %436 = tpu.dynamic_rotate %431 by %c4_i32_182 dim 0 : vector<16x32xf32>, i32 -> vector<16x32xf32>
    %c12_i32_183 = arith.constant 12 : i32
    %437 = tpu.dynamic_rotate %431 by %c12_i32_183 dim 0 : vector<16x32xf32>, i32 -> vector<16x32xf32>
    %c4_i32_184 = arith.constant 4 : i32
    %438 = vector.broadcast %c4_i32_184 : i32 to vector<16x1xi32>
    %439 = arith.cmpi sge, %43, %438 : vector<16x1xi32>
    %cst_185 = arith.constant 0.000000e+00 : f32
    %440 = vector.shape_cast %439 : vector<16x1xi1> to vector<16x1xi1>
    %441 = vector.broadcast %440 : vector<16x1xi1> to vector<16x32xi1>
    %442 = vector.broadcast %cst_185 : f32 to vector<16x32xf32>
    %443 = arith.select %441, %436, %442 : vector<16x32xi1>, vector<16x32xf32>
    %c4_i32_186 = arith.constant 4 : i32
    %444 = vector.broadcast %c4_i32_186 : i32 to vector<16x1xi32>
    %445 = arith.cmpi slt, %43, %444 : vector<16x1xi32>
    %cst_187 = arith.constant 0.000000e+00 : f32
    %446 = vector.shape_cast %445 : vector<16x1xi1> to vector<16x1xi1>
    %447 = vector.broadcast %446 : vector<16x1xi1> to vector<16x32xi1>
    %448 = vector.broadcast %cst_187 : f32 to vector<16x32xf32>
    %449 = arith.select %447, %437, %448 : vector<16x32xi1>, vector<16x32xf32>
    %450 = tpu.concatenate %443, %431, %449 in 1 : vector<16x32xf32>, vector<16x32xf32>, vector<16x32xf32> -> vector<16x96xf32>
    %cst_188 = arith.constant dense<0.000000e+00> : vector<16x32xf32>
    %451 = tpu.matmul %450, %433, %cst_188 {dimension_numbers = #tpu.dot_dimension_numbers<[1], [0], [0], [1], [0, 0, 1, 1], [], []>} : vector<16x96xf32>, vector<96x32xf32>, vector<16x32xf32> -> vector<16x32xf32>
    %452 = vector.broadcast %435 : vector<1x32xf32> to vector<16x32xf32>
    %453 = arith.addf %451, %452 : vector<16x32xf32>
    %454 = arith.addf %453, %317 : vector<16x32xf32>
    %c0_189 = arith.constant 0 : index
    %c0_190 = arith.constant 0 : index
    %455 = vector.load %arg9[%c0_189, %c0_190] : memref<32x32xf32, #tpu.memory_space<vmem>>, vector<32x32xf32>
    %cst_191 = arith.constant dense<0.000000e+00> : vector<16x32xf32>
    %456 = tpu.matmul %454, %455, %cst_191 {dimension_numbers = #tpu.dot_dimension_numbers<[1], [0], [0], [1], [0, 0, 1, 1], [], []>} : vector<16x32xf32>, vector<32x32xf32>, vector<16x32xf32> -> vector<16x32xf32>
    %c0_192 = arith.constant 0 : index
    %c0_193 = arith.constant 0 : index
    %457 = vector.load %arg10[%c0_192, %c0_193] : memref<1x32xf32, #tpu.memory_space<vmem>>, vector<1x32xf32>
    %458 = vector.broadcast %457 : vector<1x32xf32> to vector<16x32xf32>
    %459 = arith.addf %456, %458 : vector<16x32xf32>
    %cst_194 = arith.constant 5.000000e-01 : f32
    %460 = vector.broadcast %cst_194 : f32 to vector<16x32xf32>
    %461 = arith.mulf %460, %454 : vector<16x32xf32>
    %cst_195 = arith.constant 0.707106769 : f32
    %462 = vector.broadcast %cst_195 : f32 to vector<16x32xf32>
    %463 = arith.mulf %454, %462 : vector<16x32xf32>
    %cst_196 = arith.constant -3.8325069 : f32
    %cst_197 = arith.constant 3.8325069 : f32
    %464 = vector.broadcast %cst_196 : f32 to vector<16x32xf32>
    %465 = arith.maximumf %464, %463 : vector<16x32xf32>
    %466 = vector.broadcast %cst_197 : f32 to vector<16x32xf32>
    %467 = arith.minimumf %466, %465 : vector<16x32xf32>
    %468 = arith.mulf %467, %467 : vector<16x32xf32>
    %cst_198 = arith.constant -2.72614237E-10 : f32
    %469 = vector.broadcast %cst_198 : f32 to vector<16x32xf32>
    %470 = arith.mulf %469, %468 : vector<16x32xf32>
    %cst_199 = arith.constant 2.77068146E-8 : f32
    %471 = vector.broadcast %cst_199 : f32 to vector<16x32xf32>
    %472 = arith.addf %470, %471 : vector<16x32xf32>
    %473 = arith.mulf %472, %468 : vector<16x32xf32>
    %cst_200 = arith.constant -2.10102394E-6 : f32
    %474 = vector.broadcast %cst_200 : f32 to vector<16x32xf32>
    %475 = arith.addf %473, %474 : vector<16x32xf32>
    %476 = arith.mulf %475, %468 : vector<16x32xf32>
    %cst_201 = arith.constant -5.69250624E-5 : f32
    %477 = vector.broadcast %cst_201 : f32 to vector<16x32xf32>
    %478 = arith.addf %476, %477 : vector<16x32xf32>
    %479 = arith.mulf %478, %468 : vector<16x32xf32>
    %cst_202 = arith.constant -7.34990637E-4 : f32
    %480 = vector.broadcast %cst_202 : f32 to vector<16x32xf32>
    %481 = arith.addf %479, %480 : vector<16x32xf32>
    %482 = arith.mulf %481, %468 : vector<16x32xf32>
    %cst_203 = arith.constant -2.954600e-03 : f32
    %483 = vector.broadcast %cst_203 : f32 to vector<16x32xf32>
    %484 = arith.addf %482, %483 : vector<16x32xf32>
    %485 = arith.mulf %484, %468 : vector<16x32xf32>
    %cst_204 = arith.constant -0.0160960332 : f32
    %486 = vector.broadcast %cst_204 : f32 to vector<16x32xf32>
    %487 = arith.addf %485, %486 : vector<16x32xf32>
    %488 = arith.mulf %487, %467 : vector<16x32xf32>
    %cst_205 = arith.constant -1.45660715E-5 : f32
    %489 = vector.broadcast %cst_205 : f32 to vector<16x32xf32>
    %490 = arith.mulf %489, %468 : vector<16x32xf32>
    %cst_206 = arith.constant -2.13374049E-4 : f32
    %491 = vector.broadcast %cst_206 : f32 to vector<16x32xf32>
    %492 = arith.addf %490, %491 : vector<16x32xf32>
    %493 = arith.mulf %492, %468 : vector<16x32xf32>
    %cst_207 = arith.constant -0.00168282702 : f32
    %494 = vector.broadcast %cst_207 : f32 to vector<16x32xf32>
    %495 = arith.addf %493, %494 : vector<16x32xf32>
    %496 = arith.mulf %495, %468 : vector<16x32xf32>
    %cst_208 = arith.constant -0.00737332925 : f32
    %497 = vector.broadcast %cst_208 : f32 to vector<16x32xf32>
    %498 = arith.addf %496, %497 : vector<16x32xf32>
    %499 = arith.mulf %498, %468 : vector<16x32xf32>
    %cst_209 = arith.constant -0.0142647391 : f32
    %500 = vector.broadcast %cst_209 : f32 to vector<16x32xf32>
    %501 = arith.addf %499, %500 : vector<16x32xf32>
    %502 = arith.divf %488, %501 : vector<16x32xf32>
    %cst_210 = arith.constant 1.000000e+00 : f32
    %503 = vector.broadcast %cst_210 : f32 to vector<16x32xf32>
    %504 = arith.addf %503, %502 : vector<16x32xf32>
    %505 = arith.mulf %461, %504 : vector<16x32xf32>
    %c3 = arith.constant 3 : index
    %c0_211 = arith.constant 0 : index
    %c0_212 = arith.constant 0 : index
    %506 = vector.load %arg5[%c3, %c0_211, %c0_212] : memref<4x96x32xf32, #tpu.memory_space<vmem>>, vector<1x96x32xf32>
    %507 = vector.shape_cast %506 : vector<1x96x32xf32> to vector<96x32xf32>
    %c3_213 = arith.constant 3 : index
    %c0_214 = arith.constant 0 : index
    %c0_215 = arith.constant 0 : index
    %508 = vector.load %arg6[%c3_213, %c0_214, %c0_215] : memref<4x1x32xf32, #tpu.memory_space<vmem>>, vector<1x1x32xf32>
    %509 = vector.shape_cast %508 : vector<1x1x32xf32> to vector<1x32xf32>
    %c8_i32_216 = arith.constant 8 : i32
    %510 = tpu.dynamic_rotate %505 by %c8_i32_216 dim 0 : vector<16x32xf32>, i32 -> vector<16x32xf32>
    %c8_i32_217 = arith.constant 8 : i32
    %511 = tpu.dynamic_rotate %505 by %c8_i32_217 dim 0 : vector<16x32xf32>, i32 -> vector<16x32xf32>
    %c8_i32_218 = arith.constant 8 : i32
    %512 = vector.broadcast %c8_i32_218 : i32 to vector<16x1xi32>
    %513 = arith.cmpi sge, %43, %512 : vector<16x1xi32>
    %cst_219 = arith.constant 0.000000e+00 : f32
    %514 = vector.shape_cast %513 : vector<16x1xi1> to vector<16x1xi1>
    %515 = vector.broadcast %514 : vector<16x1xi1> to vector<16x32xi1>
    %516 = vector.broadcast %cst_219 : f32 to vector<16x32xf32>
    %517 = arith.select %515, %510, %516 : vector<16x32xi1>, vector<16x32xf32>
    %c0_i32_220 = arith.constant 0 : i32
    %518 = vector.broadcast %c0_i32_220 : i32 to vector<16x1xi32>
    %519 = arith.cmpi slt, %43, %518 : vector<16x1xi32>
    %cst_221 = arith.constant 0.000000e+00 : f32
    %520 = vector.shape_cast %519 : vector<16x1xi1> to vector<16x1xi1>
    %521 = vector.broadcast %520 : vector<16x1xi1> to vector<16x32xi1>
    %522 = vector.broadcast %cst_221 : f32 to vector<16x32xf32>
    %523 = arith.select %521, %511, %522 : vector<16x32xi1>, vector<16x32xf32>
    %524 = tpu.concatenate %517, %505, %523 in 1 : vector<16x32xf32>, vector<16x32xf32>, vector<16x32xf32> -> vector<16x96xf32>
    %cst_222 = arith.constant dense<0.000000e+00> : vector<16x32xf32>
    %525 = tpu.matmul %524, %507, %cst_222 {dimension_numbers = #tpu.dot_dimension_numbers<[1], [0], [0], [1], [0, 0, 1, 1], [], []>} : vector<16x96xf32>, vector<96x32xf32>, vector<16x32xf32> -> vector<16x32xf32>
    %526 = vector.broadcast %509 : vector<1x32xf32> to vector<16x32xf32>
    %527 = arith.addf %525, %526 : vector<16x32xf32>
    %cst_223 = arith.constant 5.000000e-01 : f32
    %528 = vector.broadcast %cst_223 : f32 to vector<16x32xf32>
    %529 = arith.mulf %528, %527 : vector<16x32xf32>
    %cst_224 = arith.constant 0.707106769 : f32
    %530 = vector.broadcast %cst_224 : f32 to vector<16x32xf32>
    %531 = arith.mulf %527, %530 : vector<16x32xf32>
    %cst_225 = arith.constant -3.8325069 : f32
    %cst_226 = arith.constant 3.8325069 : f32
    %532 = vector.broadcast %cst_225 : f32 to vector<16x32xf32>
    %533 = arith.maximumf %532, %531 : vector<16x32xf32>
    %534 = vector.broadcast %cst_226 : f32 to vector<16x32xf32>
    %535 = arith.minimumf %534, %533 : vector<16x32xf32>
    %536 = arith.mulf %535, %535 : vector<16x32xf32>
    %cst_227 = arith.constant -2.72614237E-10 : f32
    %537 = vector.broadcast %cst_227 : f32 to vector<16x32xf32>
    %538 = arith.mulf %537, %536 : vector<16x32xf32>
    %cst_228 = arith.constant 2.77068146E-8 : f32
    %539 = vector.broadcast %cst_228 : f32 to vector<16x32xf32>
    %540 = arith.addf %538, %539 : vector<16x32xf32>
    %541 = arith.mulf %540, %536 : vector<16x32xf32>
    %cst_229 = arith.constant -2.10102394E-6 : f32
    %542 = vector.broadcast %cst_229 : f32 to vector<16x32xf32>
    %543 = arith.addf %541, %542 : vector<16x32xf32>
    %544 = arith.mulf %543, %536 : vector<16x32xf32>
    %cst_230 = arith.constant -5.69250624E-5 : f32
    %545 = vector.broadcast %cst_230 : f32 to vector<16x32xf32>
    %546 = arith.addf %544, %545 : vector<16x32xf32>
    %547 = arith.mulf %546, %536 : vector<16x32xf32>
    %cst_231 = arith.constant -7.34990637E-4 : f32
    %548 = vector.broadcast %cst_231 : f32 to vector<16x32xf32>
    %549 = arith.addf %547, %548 : vector<16x32xf32>
    %550 = arith.mulf %549, %536 : vector<16x32xf32>
    %cst_232 = arith.constant -2.954600e-03 : f32
    %551 = vector.broadcast %cst_232 : f32 to vector<16x32xf32>
    %552 = arith.addf %550, %551 : vector<16x32xf32>
    %553 = arith.mulf %552, %536 : vector<16x32xf32>
    %cst_233 = arith.constant -0.0160960332 : f32
    %554 = vector.broadcast %cst_233 : f32 to vector<16x32xf32>
    %555 = arith.addf %553, %554 : vector<16x32xf32>
    %556 = arith.mulf %555, %535 : vector<16x32xf32>
    %cst_234 = arith.constant -1.45660715E-5 : f32
    %557 = vector.broadcast %cst_234 : f32 to vector<16x32xf32>
    %558 = arith.mulf %557, %536 : vector<16x32xf32>
    %cst_235 = arith.constant -2.13374049E-4 : f32
    %559 = vector.broadcast %cst_235 : f32 to vector<16x32xf32>
    %560 = arith.addf %558, %559 : vector<16x32xf32>
    %561 = arith.mulf %560, %536 : vector<16x32xf32>
    %cst_236 = arith.constant -0.00168282702 : f32
    %562 = vector.broadcast %cst_236 : f32 to vector<16x32xf32>
    %563 = arith.addf %561, %562 : vector<16x32xf32>
    %564 = arith.mulf %563, %536 : vector<16x32xf32>
    %cst_237 = arith.constant -0.00737332925 : f32
    %565 = vector.broadcast %cst_237 : f32 to vector<16x32xf32>
    %566 = arith.addf %564, %565 : vector<16x32xf32>
    %567 = arith.mulf %566, %536 : vector<16x32xf32>
    %cst_238 = arith.constant -0.0142647391 : f32
    %568 = vector.broadcast %cst_238 : f32 to vector<16x32xf32>
    %569 = arith.addf %567, %568 : vector<16x32xf32>
    %570 = arith.divf %556, %569 : vector<16x32xf32>
    %cst_239 = arith.constant 1.000000e+00 : f32
    %571 = vector.broadcast %cst_239 : f32 to vector<16x32xf32>
    %572 = arith.addf %571, %570 : vector<16x32xf32>
    %573 = arith.mulf %529, %572 : vector<16x32xf32>
    %c3_240 = arith.constant 3 : index
    %c0_241 = arith.constant 0 : index
    %c0_242 = arith.constant 0 : index
    %574 = vector.load %arg7[%c3_240, %c0_241, %c0_242] : memref<4x96x32xf32, #tpu.memory_space<vmem>>, vector<1x96x32xf32>
    %575 = vector.shape_cast %574 : vector<1x96x32xf32> to vector<96x32xf32>
    %c3_243 = arith.constant 3 : index
    %c0_244 = arith.constant 0 : index
    %c0_245 = arith.constant 0 : index
    %576 = vector.load %arg8[%c3_243, %c0_244, %c0_245] : memref<4x1x32xf32, #tpu.memory_space<vmem>>, vector<1x1x32xf32>
    %577 = vector.shape_cast %576 : vector<1x1x32xf32> to vector<1x32xf32>
    %c8_i32_246 = arith.constant 8 : i32
    %578 = tpu.dynamic_rotate %573 by %c8_i32_246 dim 0 : vector<16x32xf32>, i32 -> vector<16x32xf32>
    %c8_i32_247 = arith.constant 8 : i32
    %579 = tpu.dynamic_rotate %573 by %c8_i32_247 dim 0 : vector<16x32xf32>, i32 -> vector<16x32xf32>
    %c8_i32_248 = arith.constant 8 : i32
    %580 = vector.broadcast %c8_i32_248 : i32 to vector<16x1xi32>
    %581 = arith.cmpi sge, %43, %580 : vector<16x1xi32>
    %cst_249 = arith.constant 0.000000e+00 : f32
    %582 = vector.shape_cast %581 : vector<16x1xi1> to vector<16x1xi1>
    %583 = vector.broadcast %582 : vector<16x1xi1> to vector<16x32xi1>
    %584 = vector.broadcast %cst_249 : f32 to vector<16x32xf32>
    %585 = arith.select %583, %578, %584 : vector<16x32xi1>, vector<16x32xf32>
    %c0_i32_250 = arith.constant 0 : i32
    %586 = vector.broadcast %c0_i32_250 : i32 to vector<16x1xi32>
    %587 = arith.cmpi slt, %43, %586 : vector<16x1xi32>
    %cst_251 = arith.constant 0.000000e+00 : f32
    %588 = vector.shape_cast %587 : vector<16x1xi1> to vector<16x1xi1>
    %589 = vector.broadcast %588 : vector<16x1xi1> to vector<16x32xi1>
    %590 = vector.broadcast %cst_251 : f32 to vector<16x32xf32>
    %591 = arith.select %589, %579, %590 : vector<16x32xi1>, vector<16x32xf32>
    %592 = tpu.concatenate %585, %573, %591 in 1 : vector<16x32xf32>, vector<16x32xf32>, vector<16x32xf32> -> vector<16x96xf32>
    %cst_252 = arith.constant dense<0.000000e+00> : vector<16x32xf32>
    %593 = tpu.matmul %592, %575, %cst_252 {dimension_numbers = #tpu.dot_dimension_numbers<[1], [0], [0], [1], [0, 0, 1, 1], [], []>} : vector<16x96xf32>, vector<96x32xf32>, vector<16x32xf32> -> vector<16x32xf32>
    %594 = vector.broadcast %577 : vector<1x32xf32> to vector<16x32xf32>
    %595 = arith.addf %593, %594 : vector<16x32xf32>
    %596 = arith.addf %595, %459 : vector<16x32xf32>
    %c0_253 = arith.constant 0 : index
    %c0_254 = arith.constant 0 : index
    %597 = vector.load %arg11[%c0_253, %c0_254] : memref<16x32xf32, #tpu.memory_space<vmem>>, vector<16x32xf32>
    tpu.vector_store %arg11[%c0_253, %c0_254], %596 {strides = array<i32>} : memref<16x32xf32, #tpu.memory_space<vmem>>, vector<16x32xf32>,
    return
  }
  func.func @transform_0(%arg0: i32) -> (i32, i32) {
    %c0_i32 = arith.constant 0 : i32
    %c0_i32_0 = arith.constant 0 : i32
    return %arg0, %c0_i32 : i32, i32
  }
  func.func @transform_1(%arg0: i32) -> (i32, i32) {
    %c0_i32 = arith.constant 0 : i32
    %c0_i32_0 = arith.constant 0 : i32
    return %arg0, %c0_i32 : i32, i32
  }
  func.func @transform_2(%arg0: i32) -> (i32, i32) {
    %c0_i32 = arith.constant 0 : i32
    %c0_i32_0 = arith.constant 0 : i32
    %c0_i32_1 = arith.constant 0 : i32
    return %c0_i32, %c0_i32_0 : i32, i32
  }
  func.func @transform_3(%arg0: i32) -> (i32, i32) {
    %c0_i32 = arith.constant 0 : i32
    %c0_i32_0 = arith.constant 0 : i32
    %c0_i32_1 = arith.constant 0 : i32
    return %c0_i32, %c0_i32_0 : i32, i32
  }
  func.func @transform_4(%arg0: i32) -> (i32, i32, i32) {
    %c0_i32 = arith.constant 0 : i32
    %c0_i32_0 = arith.constant 0 : i32
    %c0_i32_1 = arith.constant 0 : i32
    %c0_i32_2 = arith.constant 0 : i32
    return %c0_i32, %c0_i32_0, %c0_i32_1 : i32, i32, i32
  }
  func.func @transform_5(%arg0: i32) -> (i32, i32, i32) {
    %c0_i32 = arith.constant 0 : i32
    %c0_i32_0 = arith.constant 0 : i32
    %c0_i32_1 = arith.constant 0 : i32
    %c0_i32_2 = arith.constant 0 : i32
    return %c0_i32, %c0_i32_0, %c0_i32_1 : i32, i32, i32
  }
  func.func @transform_6(%arg0: i32) -> (i32, i32, i32) {
    %c0_i32 = arith.constant 0 : i32
    %c0_i32_0 = arith.constant 0 : i32
    %c0_i32_1 = arith.constant 0 : i32
    %c0_i32_2 = arith.constant 0 : i32
    return %c0_i32, %c0_i32_0, %c0_i32_1 : i32, i32, i32
  }
  func.func @transform_7(%arg0: i32) -> (i32, i32, i32) {
    %c0_i32 = arith.constant 0 : i32
    %c0_i32_0 = arith.constant 0 : i32
    %c0_i32_1 = arith.constant 0 : i32
    %c0_i32_2 = arith.constant 0 : i32
    return %c0_i32, %c0_i32_0, %c0_i32_1 : i32, i32, i32
  }
  func.func @transform_8(%arg0: i32) -> (i32, i32) {
    %c0_i32 = arith.constant 0 : i32
    %c0_i32_0 = arith.constant 0 : i32
    %c0_i32_1 = arith.constant 0 : i32
    return %c0_i32, %c0_i32_0 : i32, i32
  }
  func.func @transform_9(%arg0: i32) -> (i32, i32) {
    %c0_i32 = arith.constant 0 : i32
    %c0_i32_0 = arith.constant 0 : i32
    %c0_i32_1 = arith.constant 0 : i32
    return %c0_i32, %c0_i32_0 : i32, i32
  }
  func.func @transform_10(%arg0: i32) -> (i32, i32) {
    %c0_i32 = arith.constant 0 : i32
    %c0_i32_0 = arith.constant 0 : i32
    return %arg0, %c0_i32 : i32, i32
  }
}

</mosaic_0001>

<bundles_post_ra>
// kernel: tpu_custom_call.1
= control target key start
LH: loop header
LB: loop body
LE: loop exit
PB: predicated region body
PF: predicated region fallthrough
CT: control target
= control target key end

     0   :  { %vm42_vm0 = vcmask 392192   ;;  %v1748_v4 = vmov 0.0   ;;  %s2511_s0 = inlined_call_operand.vmem [shape: f32[16,48], index: 0, kind: input, shape index: {}]   ;;  %s2512_s1 = inlined_call_operand.vmem [shape: f32[16,1], index: 1, kind: input, shape index: {}]   ;;  %s2513_s2 = inlined_call_operand.vmem [shape: f32[48,32], index: 2, kind: input, shape index: {}]   ;;  %s2514_s3 = inlined_call_operand.vmem [shape: f32[1,32], index: 3, kind: input, shape index: {}]   ;;  %s2515_s4 = inlined_call_operand.vmem [shape: f32[4,96,32], index: 4, kind: input, shape index: {}]   ;;  %s2516_s5 = inlined_call_operand.vmem [shape: f32[4,1,32], index: 5, kind: input, shape index: {}]   ;;  %s2517_s6 = inlined_call_operand.vmem [shape: f32[4,96,32], index: 6, kind: input, shape index: {}]   ;;  %s2518_s7 = inlined_call_operand.vmem [shape: f32[4,1,32], index: 7, kind: input, shape index: {}]   ;;  %s2519_s8 = inlined_call_operand.vmem [shape: f32[32,32], index: 8, kind: input, shape index: {}]   ;;  %s2520_s9 = inlined_call_operand.vmem [shape: f32[1,32], index: 9, kind: input, shape index: {}]   ;;  %s2521_s10 = inlined_call_operand.hbm [shape: f32[16,32], index: 10, kind: output, shape index: {}]  }
   0x1   :  { %v36_v0 = vld [vmem:[%s2511_s0] sm:$0xff]  ;;  %v37_v1 = vld [vmem:[%s2511_s0 + $0x8] sm:$0xff]  ;;  %v60_v6 = vld [vmem:[%s2513_s2 + $0x18] sm:$0xff] }
   0x2   :  { %v62_v2 = vld [vmem:[%s2513_s2 + $0x28] sm:$0xff]  ;;  %vm38_vm1 = vcmp.ne.f32.partialorder %v36_v0, %v36_v0  ;;  %v61_v3 = vld [vmem:[%s2513_s2 + $0x20] sm:$0xff]  ;;  %vm39_vm2 = vcmp.ne.f32.partialorder %v37_v1, %v37_v1  ;;  %v59_v8 = vld [vmem:[%s2513_s2 + $0x10] sm:$0xff] }
   0x3   :  { %83 = vmatpush.msra.mxu0 %v62_v2  ;;  %v40_v5 = vsel %vm38_vm1, 1.0, %v1748_v4  ;;  %v41_v9 = vsel %vm39_vm2, 1.0, %v1748_v4  ;;  %v58_v10 = vld [vmem:[%s2513_s2 + $0x8] sm:$0xff] }
   0x4   :  { %v43_v7 = vsel %vm42_vm0, %v40_v5, -inf }
   0x5   :  { %84 = vmatpush.msra.mxu0 %v61_v3  ;;  %44 = vmax.xlane.f32.xlu0 %v43_v7 }
   0x7   :  { %85 = vmatpush.msra.mxu0 %v60_v6 }
   0x8   :  { %15 = vsyncpa [#allocation3], 0  ;;  %v46_v11 = vsel %vm42_vm0, %v41_v9, -inf  ;;  %v57_v12 = vld [vmem:[%s2513_s2] sm:$0xff]  ;;  %v1749_v13 = vmov 0   ;;  %vm1750_vm5 = vmmov 1  }
   0x9   :  { %86 = vmatpush.msra.mxu0 %v59_v8  ;;  %1678 = vset.pattern.permute.xlu1 %v1749_v13  ;;  %v96_v14 = vld [vmem:[%s2512_s1] sm:$0xff]  ;;  %v97_v18 = vld [vmem:[%s2512_s1 + $0x8] sm:$0xff]  ;;  %v240_v6 = vld [vmem:[%s2515_s4 + $0x58] sm:$0xff]  ;;  %s1751_s21 = smov 32   ;;  %s1752_s22 = smov 64  }
   0xa   :  { %1679 = vset.pattern.permute.xlu0 %v1749_v13  ;;  %vm98_vm3 = vcmp.gt.f32.partialorder %v96_v14, 0.5  ;;  %vm99_vm8 = vcmp.gt.f32.partialorder %v97_v18, 0.5  ;;  %v1680_v23 = vld [vmem:[%s2514_s3] ss:$0 sm:$0xff]  ;;  %v239_v7 = vld [vmem:[%s2515_s4 + $0x50] sm:$0xff]  ;;  %304 = vmatpush.msra.mxu1 %v240_v6  ;;  %v232_v6 = vld [vmem:[%s2515_s4 + $0x18] sm:$0xff] }
   0xb   :  { %87 = vmatpush.msra.mxu0 %v58_v10  ;;  %v238_v10 = vld [vmem:[%s2515_s4 + $0x48] sm:$0xff]  ;;  %s1544_s26 = sshll.u32 %s2521_s10, 4  ;;  %s1545_s26 = int_to_ptr.hbm [resolvable:$true] %s1544_s26 }
   0xc   :  { %305 = vmatpush.msra.mxu1 %v239_v7  ;;  %v231_v7 = vld [vmem:[%s2515_s4 + $0x10] sm:$0xff] }
   0xd   :  { %47 = vmax.xlane.f32.xlu0 %v46_v11  ;;  %88 = vmatpush.msra.mxu0 %v57_v12 }
   0xe   :  { %306 = vmatpush.msra.mxu1 %v238_v10 }
  0x78   :  { %v45_v15 = vpop.xlane.xlu0 %44 }
  0x79   :  { %vm49_vm4 = vcmp.gt.f32.partialorder %v45_v15, 0.5  ;;  %v237_v15 = vld [vmem:[%s2515_s4 + $0x40] sm:$0xff] }
  0x7a   :  { %v55_v16 = vsel %vm49_vm4, 0.0, %v36_v0  ;;  %vm100_vm6 = vmxor %vm49_vm4, %vm1750_vm5  ;;  %307 = vmatpush.msra.mxu1 %v237_v15 }
  0x7b   :  { %1556 = vmatmul.msk.f32.vlgmr.msra.gmra.mxu0 %vm42_vm0, %v55_v16  ;;  %vm102_vm7 = vmand %vm98_vm3, %vm100_vm6 }
  0x7c   :  { %v104_v17 = vsel %vm102_vm7, 1, %v1749_v13 }
  0x7d   :  { %107 = vperm.xlu1 %1678, %v104_v17   ;;  %v236_v17 = vld [vmem:[%s2515_s4 + $0x38] sm:$0xff] }
  0x7e   :  { %308 = vmatpush.msra.mxu1 %v236_v17 }
  0x80   :  { %v48_v19 = vpop.xlane.xlu0 %47 }
  0x81   :  { %vm50_vm9 = vcmp.gt.f32.partialorder %v48_v19, 0.5 }
  0x82   :  { %v56_v20 = vsel %vm50_vm9, 0.0, %v37_v1  ;;  %vm101_vm10 = vmxor %vm50_vm9, %vm1750_vm5 }
  0x83   :  { %vm103_vm11 = vmand %vm99_vm8, %vm101_vm10  ;;  %1557 = vmatmul.msk.f32.gmra.mxu0 %vm42_vm0, %v56_v20 }
  0x84   :  { %v105_v21 = vsel %vm103_vm11, 1, %v1749_v13  ;;  %vm284_vm11 = vcmask 261120  }
  0x85   :  { %110 = vperm.xlu1 %1678, %v105_v21  }
  0xef   :  { %v108_v22 = vpop.permute.xlu1 %107 }
  0xf0   :  { %vm112_vm12 = vcmp.eq.s32.totalorder %v108_v22, 1 }
  0xf7   :  { %v111_v29 = vpop.permute.xlu1 %110 }
  0xf8   :  { %v90_v24 = vpop.f32.mrf.mxu0  ;;  %vm113_vm13 = vcmp.eq.s32.totalorder %v111_v29, 1 }
  0xf9   :  { %v91_v25 = vadd.f32 %v1680_v23, %v90_v24 }
  0xfb   :  { %v1850_v26 = vsel %vm112_vm12, %v91_v25, 0.0  ;;  %vm287_vm12 = vcmask 523264  }
  0xfc   :  { %v145_v27 = vmul.f32 0.70710677, %v1850_v26 }
  0xfe   :  { %v1853_v28 = vclamps-f32 %v145_v27, 3.832507  ;;  %v116_v27 = vlaneseq }
 0x100   :  { %v151_v30 = vmul.f32 %v1853_v28, %v1853_v28  ;;  %v93_v31 = vpop.f32.mrf.mxu0 }
 0x101   :  { %v94_v32 = vadd.f32 %v1680_v23, %v93_v31 }
 0x102   :  { %v153_v33 = vmul.f32 -2.7261424e-10, %v151_v30  ;;  %v179_v34 = vmul.f32 -1.45660715e-05, %v151_v30 }
 0x103   :  { %v1857_v35 = vsel %vm113_vm13, %v94_v32, 0.0  ;;  %vm293_vm13 = vcmask 785408  }
 0x104   :  { %v155_v36 = vadd.f32 2.7706815e-08, %v153_v33  ;;  %v146_v37 = vmul.f32 0.70710677, %v1857_v35  ;;  %v181_v38 = vadd.f32 -0.00021337405, %v179_v34 }
 0x106   :  { %v157_v39 = vmul.f32 %v155_v36, %v151_v30  ;;  %v1860_v40 = vclamps-f32 %v146_v37, 3.832507  ;;  %v183_v41 = vmul.f32 %v181_v38, %v151_v30  ;;  %v143_v37 = vmul.f32 0.5, %v1850_v26 }
 0x108   :  { %v159_v42 = vadd.f32 -2.101024e-06, %v157_v39  ;;  %v152_v43 = vmul.f32 %v1860_v40, %v1860_v40  ;;  %v185_v44 = vadd.f32 -0.001682827, %v183_v41  ;;  %v1881_v41 = vshrl.u32 %v116_v27, 7 }
 0x10a   :  { %v161_v45 = vmul.f32 %v159_v42, %v151_v30  ;;  %v154_v46 = vmul.f32 -2.7261424e-10, %v152_v43  ;;  %v180_v47 = vmul.f32 -1.45660715e-05, %v152_v43  ;;  %v187_v48 = vmul.f32 %v185_v44, %v151_v30 }
 0x10b   :  { %vm249_vm6 = vcmp.lt.s32.totalorder %v1881_v41, 7  ;;  %vm244_vm9 = vcmp.lt.s32.totalorder %v1881_v41, 1 }
 0x10c   :  { %v163_v49 = vadd.f32 -5.6925062e-05, %v161_v45  ;;  %v156_v50 = vadd.f32 2.7706815e-08, %v154_v46  ;;  %v182_v51 = vadd.f32 -0.00021337405, %v180_v47 }
 0x10d   :  { %v189_v52 = vadd.f32 -0.0073733293, %v187_v48 }
 0x10e   :  { %v165_v53 = vmul.f32 %v163_v49, %v151_v30  ;;  %v158_v54 = vmul.f32 %v156_v50, %v152_v43  ;;  %v184_v55 = vmul.f32 %v182_v51, %v152_v43 }
 0x10f   :  { %v191_v56 = vmul.f32 %v189_v52, %v151_v30 }
 0x110   :  { %v167_v57 = vadd.f32 -0.00073499064, %v165_v53  ;;  %v160_v58 = vadd.f32 -2.101024e-06, %v158_v54  ;;  %v186_v59 = vadd.f32 -0.001682827, %v184_v55 }
 0x111   :  { %v193_v60 = vadd.f32 -0.014264739, %v191_v56  ;;  %v1889_v53 = vand.u32 7, %v1881_v41  ;;  %v144_v54 = vmul.f32 0.5, %v1857_v35 }
 0x112   :  { %v169_v61 = vmul.f32 %v167_v57, %v151_v30  ;;  %v162_v62 = vmul.f32 %v160_v58, %v152_v43  ;;  %v188_v63 = vmul.f32 %v186_v59, %v152_v43 }
 0x113   :  { %1690 = vrcp.f32 %v193_v60  ;;  %v204_v18 = vand.u32 2147483647, %v193_v60  ;;  %v206_v19 = vand.u32 2147483648, %v193_v60  ;;  %vm200_vm15 = vweird.f32 %v193_v60 }
 0x114   :  { %v164_v0 = vadd.f32 -5.6925062e-05, %v162_v62  ;;  %v190_v1 = vadd.f32 -0.0073733293, %v188_v63  ;;  %v171_v2 = vadd.f32 -0.0029546, %v169_v61 }
 0x115   :  { %vm205_vm1 = vcmp.eq.f32.partialorder %v204_v18, 8.507059e+37  ;;  %v207_v25 = vor.u32 1.1754944e-38, %v206_v19  ;;  %vm260_vm8 = vcmp.lt.s32.totalorder %v1889_v53, 7  ;;  %vm252_vm10 = vcmp.ge.s32.totalorder %v1889_v53, 1 }
 0x116   :  { %v166_v3 = vmul.f32 %v164_v0, %v152_v43  ;;  %v192_v5 = vmul.f32 %v190_v1, %v152_v43  ;;  %v173_v12 = vmul.f32 %v171_v2, %v151_v30  ;;  %v235_v2 = vld [vmem:[%s2515_s4 + $0x30] sm:$0xff] }
 0x117   :  { %309 = vmatpush.msra.mxu1 %v235_v2 }
 0x118   :  { %v168_v8 = vadd.f32 -0.00073499064, %v166_v3  ;;  %v194_v9 = vadd.f32 -0.014264739, %v192_v5  ;;  %v175_v20 = vadd.f32 -0.016096033, %v173_v12 }
 0x119   :  { %v1691_v11 = vpop.eup %1690  ;;  %v234_v3 = vld [vmem:[%s2515_s4 + $0x28] sm:$0xff]  ;;  %v233_v5 = vld [vmem:[%s2515_s4 + $0x20] sm:$0xff] }
 0x11a   :  { %v170_v13 = vmul.f32 %v168_v8, %v152_v43  ;;  %v196_v14 = vmul.f32 %v1691_v11, %v193_v60  ;;  %1692 = vrcp.f32 %v194_v9  ;;  %vm201_vm14 = vweird.f32 %v1691_v11  ;;  %310 = vmatpush.msra.mxu1 %v234_v3  ;;  %v230_v8 = vld [vmem:[%s2515_s4 + $0x8] sm:$0xff] }
 0x11b   :  { %vm202_vm0 = vmor %vm200_vm15, %vm201_vm14  ;;  %v177_v29 = vmul.f32 %v1853_v28, %v175_v20  ;;  %v219_v38 = vand.u32 2147483647, %v194_v9  ;;  %v221_v39 = vand.u32 2147483648, %v194_v9  ;;  %vm215_vm3 = vweird.f32 %v194_v9  ;;  %v1681_v20 = vld [vmem:[%s2516_s5] ss:$0 sm:$0xff] }
 0x11c   :  { %v197_v16 = vsub.f32 1.0, %v196_v14  ;;  %v172_v21 = vadd.f32 -0.0029546, %v170_v13  ;;  %311 = vmatpush.msra.mxu1 %v233_v5 }
 0x11d   :  { %v222_v28 = vor.u32 1.1754944e-38, %v221_v39  ;;  %vm220_vm5 = vcmp.eq.f32.partialorder %v219_v38, 8.507059e+37 }
 0x11e   :  { %v198_v22 = vmul.f32 %v1691_v11, %v197_v16  ;;  %v174_v30 = vmul.f32 %v172_v21, %v152_v43  ;;  %v118_v43 = vadd.s32 8, %v1881_v41  ;;  %312 = vmatpush.msra.mxu1 %v232_v6 }
 0x120   :  { %v199_v23 = vadd.f32 %v1691_v11, %v198_v22  ;;  %v1693_v24 = vpop.eup %1692  ;;  %v176_v42 = vadd.f32 -0.016096033, %v174_v30  ;;  %v1886_v52 = vand.u32 7, %v118_v43  ;;  %313 = vmatpush.msra.mxu1 %v231_v7 }
 0x121   :  { %v211_v32 = vmul.f32 %v1693_v24, %v194_v9  ;;  %vm216_vm2 = vweird.f32 %v1693_v24  ;;  %v229_v9 = vld [vmem:[%s2515_s4] sm:$0xff] }
 0x122   :  { %v203_v31 = vsel %vm202_vm0, %v1691_v11, %v199_v23  ;;  %vm217_vm4 = vmor %vm215_vm3, %vm216_vm2  ;;  %v178_v48 = vmul.f32 %v1860_v40, %v176_v42  ;;  %vm261_vm7 = vcmp.lt.s32.totalorder %v1886_v52, 7  ;;  %314 = vmatpush.msra.mxu1 %v230_v8  ;;  %vm253_vm14 = vcmp.ge.s32.totalorder %v1886_v52, 1 }
 0x123   :  { %v208_v33 = vsel %vm205_vm1, %v207_v25, %v203_v31  ;;  %v212_v36 = vsub.f32 1.0, %v211_v32 }
 0x124   :  { %v209_v34 = vmul.f32 %v208_v33, %v177_v29  ;;  %315 = vmatpush.msra.mxu1 %v229_v9 }
 0x125   :  { %v213_v45 = vmul.f32 %v1693_v24, %v212_v36 }
 0x126   :  { %v225_v44 = vadd.f32 1.0, %v209_v34 }
 0x127   :  { %v214_v47 = vadd.f32 %v1693_v24, %v213_v45 }
 0x128   :  { %v227_v46 = vmul.f32 %v225_v44, %v143_v37 }
 0x129   :  { %v218_v49 = vsel %vm217_vm4, %v1693_v24, %v214_v47 }
 0x12a   :  { %270 = vrot.lane.b32.xlu2 %v227_v46, %s1751_s21  ;;  %v223_v50 = vsel %vm220_vm5, %v222_v28, %v218_v49  ;;  %v242_v40 = vrot.slane %v227_v46, 7  ;;  %v247_v58 = vrot.slane %v227_v46, 1 }
 0x12b   :  { %v224_v51 = vmul.f32 %v223_v50, %v178_v48 }
 0x12d   :  { %v226_v55 = vadd.f32 1.0, %v224_v51 }
 0x12f   :  { %v228_v56 = vmul.f32 %v226_v55, %v144_v54 }
 0x131   :  { %272 = vrot.lane.b32.xlu0 %v228_v56, %s1751_s21  ;;  %v243_v57 = vrot.slane %v228_v56, 7  ;;  %v248_v59 = vrot.slane %v228_v56, 1 }
 0x133   :  { %v251_v60 = vsel %vm249_vm6, %v248_v59, %v247_v58  ;;  %v250_v61 = vsel %vm249_vm6, %v247_v58, %v248_v59  ;;  %v246_v62 = vsel %vm244_vm9, %v243_v57, %v242_v40  ;;  %v245_v63 = vsel %vm244_vm9, %v242_v40, %v243_v57 }
 0x134   :  { %v267_v0 = vsel %vm261_vm7, %v251_v60, 0.0  ;;  %v266_v1 = vsel %vm260_vm8, %v250_v61, 0.0  ;;  %v258_v11 = vsel %vm252_vm10, %v246_v62, 0.0  ;;  %v259_v16 = vsel %vm253_vm14, %v245_v63, 0.0 }
 0x135   :  { %280 = vrot.lane.b32.xlu1 %v267_v0, %s1752_s22  ;;  %278 = vrot.lane.b32.xlu2 %v266_v1, %s1752_s22 }
 0x184   :  { %v271_v10 = vpop.permute.xlu2 %270 }
 0x185   :  { %v285_v12 = vsel %vm284_vm11, %v258_v11, %v271_v10 }
 0x18f   :  { %v279_v13 = vpop.permute.xlu2 %278 }
 0x190   :  { %v288_v14 = vsel %vm287_vm12, %v285_v12, %v279_v13 }
 0x191   :  { %1560 = vmatmul.msk.f32.vlgmr.msra.gmra.mxu1 %vm293_vm13, %v288_v14 }
 0x1a3   :  { %v273_v15 = vpop.permute.xlu0 %272 }
 0x1a4   :  { %v286_v17 = vsel %vm284_vm11, %v259_v16, %v273_v15 }
 0x1a7   :  { %v281_v18 = vpop.permute.xlu1 %280 }
 0x1a8   :  { %v289_v19 = vsel %vm287_vm12, %v286_v17, %v281_v18 }
 0x1a9   :  { %1561 = vmatmul.msk.f32.gmra.mxu1 %vm293_vm13, %v289_v19 }
 0x20e   :  { %v317_v21 = vpop.f32.mrf.mxu1 }
 0x20f   :  { %v318_v22 = vadd.f32 %v1681_v20, %v317_v21 }
 0x211   :  { %v325_v23 = vmul.f32 0.70710677, %v318_v22  ;;  %v323_v17 = vmul.f32 0.5, %v318_v22 }
 0x213   :  { %v1562_v24 = vclamps-f32 %v325_v23, 3.832507 }
 0x215   :  { %v331_v25 = vmul.f32 %v1562_v24, %v1562_v24 }
 0x217   :  { %v333_v27 = vmul.f32 -2.7261424e-10, %v331_v25  ;;  %v359_v29 = vmul.f32 -1.45660715e-05, %v331_v25 }
 0x219   :  { %v335_v30 = vadd.f32 2.7706815e-08, %v333_v27  ;;  %v361_v31 = vadd.f32 -0.00021337405, %v359_v29 }
 0x21b   :  { %v337_v32 = vmul.f32 %v335_v30, %v331_v25  ;;  %v363_v33 = vmul.f32 %v361_v31, %v331_v25 }
 0x21d   :  { %v339_v34 = vadd.f32 -2.101024e-06, %v337_v32  ;;  %v365_v36 = vadd.f32 -0.001682827, %v363_v33 }
 0x21f   :  { %v341_v37 = vmul.f32 %v339_v34, %v331_v25  ;;  %v367_v38 = vmul.f32 %v365_v36, %v331_v25 }
 0x221   :  { %v343_v39 = vadd.f32 -5.6925062e-05, %v341_v37  ;;  %v369_v42 = vadd.f32 -0.0073733293, %v367_v38 }
 0x223   :  { %v345_v44 = vmul.f32 %v343_v39, %v331_v25  ;;  %v371_v45 = vmul.f32 %v369_v42, %v331_v25 }
 0x225   :  { %v347_v46 = vadd.f32 -0.00073499064, %v345_v44  ;;  %v373_v47 = vadd.f32 -0.014264739, %v371_v45 }
 0x226   :  { %v320_v28 = vpop.f32.mrf.mxu1 }
 0x227   :  { %v349_v43 = vmul.f32 %v347_v46, %v331_v25  ;;  %v1947_v48 = vadd.f32 %v1681_v20, %v320_v28  ;;  %1694 = vrcp.f32 %v373_v47  ;;  %v386_v61 = vand.u32 2147483648, %v373_v47 }
 0x228   :  { %v384_v1 = vand.u32 2147483647, %v373_v47  ;;  %vm380_vm0 = vweird.f32 %v373_v47 }
 0x229   :  { %v326_v49 = vmul.f32 0.70710677, %v1947_v48  ;;  %v351_v50 = vadd.f32 -0.0029546, %v349_v43  ;;  %v387_v7 = vor.u32 1.1754944e-38, %v386_v61  ;;  %v324_v46 = vmul.f32 0.5, %v1947_v48 }
 0x22a   :  { %vm385_vm2 = vcmp.eq.f32.partialorder %v384_v1, 8.507059e+37  ;;  %v417_v61 = vld [vmem:[%s2517_s6 + $0x40] sm:$0xff] }
 0x22b   :  { %v1563_v51 = vclamps-f32 %v326_v49, 3.832507  ;;  %v353_v56 = vmul.f32 %v351_v50, %v331_v25  ;;  %v413_v1 = vld [vmem:[%s2517_s6 + $0x20] sm:$0xff] }
 0x22d   :  { %v1695_v54 = vpop.eup %1694  ;;  %v332_v55 = vmul.f32 %v1563_v51, %v1563_v51  ;;  %v355_v63 = vadd.f32 -0.016096033, %v353_v56 }
 0x22e   :  { %v376_v40 = vmul.f32 %v1695_v54, %v373_v47  ;;  %vm381_vm15 = vweird.f32 %v1695_v54 }
 0x22f   :  { %v334_v57 = vmul.f32 -2.7261424e-10, %v332_v55  ;;  %v360_v58 = vmul.f32 -1.45660715e-05, %v332_v55  ;;  %vm382_vm1 = vmor %vm380_vm0, %vm381_vm15  ;;  %v357_v9 = vmul.f32 %v1562_v24, %v355_v63  ;;  %v415_v63 = vld [vmem:[%s2517_s6 + $0x30] sm:$0xff] }
 0x230   :  { %v377_v59 = vsub.f32 1.0, %v376_v40 }
 0x231   :  { %v336_v60 = vadd.f32 2.7706815e-08, %v334_v57  ;;  %v362_v62 = vadd.f32 -0.00021337405, %v360_v58  ;;  %v420_v58 = vld [vmem:[%s2517_s6 + $0x58] sm:$0xff] }
 0x232   :  { %v378_v0 = vmul.f32 %v1695_v54, %v377_v59  ;;  %v419_v59 = vld [vmem:[%s2517_s6 + $0x50] sm:$0xff]  ;;  %467 = vmatpush.msra.mxu2 %v420_v58 }
 0x233   :  { %v338_v2 = vmul.f32 %v336_v60, %v332_v55  ;;  %v364_v3 = vmul.f32 %v362_v62, %v332_v55  ;;  %v418_v60 = vld [vmem:[%s2517_s6 + $0x48] sm:$0xff]  ;;  %v416_v62 = vld [vmem:[%s2517_s6 + $0x38] sm:$0xff] }
 0x234   :  { %v379_v5 = vadd.f32 %v1695_v54, %v378_v0  ;;  %468 = vmatpush.msra.mxu2 %v419_v59  ;;  %v414_v0 = vld [vmem:[%s2517_s6 + $0x28] sm:$0xff] }
 0x235   :  { %v340_v6 = vadd.f32 -2.101024e-06, %v338_v2  ;;  %v366_v8 = vadd.f32 -0.001682827, %v364_v3  ;;  %v412_v2 = vld [vmem:[%s2517_s6 + $0x18] sm:$0xff]  ;;  %v411_v3 = vld [vmem:[%s2517_s6 + $0x10] sm:$0xff] }
 0x236   :  { %v383_v10 = vsel %vm382_vm1, %v1695_v54, %v379_v5  ;;  %469 = vmatpush.msra.mxu2 %v418_v60  ;;  %v410_v5 = vld [vmem:[%s2517_s6 + $0x8] sm:$0xff] }
 0x237   :  { %v342_v11 = vmul.f32 %v340_v6, %v332_v55  ;;  %v388_v12 = vsel %vm385_vm2, %v387_v7, %v383_v10  ;;  %v368_v13 = vmul.f32 %v366_v8, %v332_v55  ;;  %v409_v6 = vld [vmem:[%s2517_s6] sm:$0xff]  ;;  %vm596_vm2 = vcmp.lt.s32.totalorder %v1881_v41, 6 }
 0x238   :  { %v389_v14 = vmul.f32 %v388_v12, %v357_v9  ;;  %470 = vmatpush.msra.mxu2 %v417_v61 }
 0x239   :  { %v344_v15 = vadd.f32 -5.6925062e-05, %v342_v11  ;;  %v370_v16 = vadd.f32 -0.0073733293, %v368_v13 }
 0x23a   :  { %v405_v18 = vadd.f32 1.0, %v389_v14  ;;  %471 = vmatpush.msra.mxu2 %v416_v62 }
 0x23b   :  { %v346_v19 = vmul.f32 %v344_v15, %v332_v55  ;;  %v372_v20 = vmul.f32 %v370_v16, %v332_v55 }
 0x23c   :  { %v407_v21 = vmul.f32 %v405_v18, %v323_v17  ;;  %472 = vmatpush.msra.mxu2 %v415_v63  ;;  %v1682_v17 = vld [vmem:[%s2518_s7] ss:$0 sm:$0xff] }
 0x23d   :  { %v348_v23 = vadd.f32 -0.00073499064, %v346_v19  ;;  %v374_v25 = vadd.f32 -0.014264739, %v372_v20 }
 0x23e   :  { %436 = vrot.lane.b32.xlu2 %v407_v21, %s1751_s21  ;;  %v422_v43 = vrot.slane %v407_v21, 7  ;;  %v426_v50 = vrot.slane %v407_v21, 1  ;;  %473 = vmatpush.msra.mxu2 %v414_v0 }
 0x23f   :  { %v350_v27 = vmul.f32 %v348_v23, %v332_v55  ;;  %1696 = vrcp.f32 %v374_v25  ;;  %v401_v33 = vand.u32 2147483648, %v374_v25  ;;  %v399_v22 = vand.u32 2147483647, %v374_v25 }
 0x240   :  { %vm395_vm4 = vweird.f32 %v374_v25  ;;  %474 = vmatpush.msra.mxu2 %v413_v1 }
 0x241   :  { %v352_v24 = vadd.f32 -0.0029546, %v350_v27  ;;  %v402_v38 = vor.u32 1.1754944e-38, %v401_v33  ;;  %vm400_vm15 = vcmp.eq.f32.partialorder %v399_v22, 8.507059e+37 }
 0x242   :  { %475 = vmatpush.msra.mxu2 %v412_v2 }
 0x243   :  { %v354_v30 = vmul.f32 %v352_v24, %v332_v55 }
 0x244   :  { %476 = vmatpush.msra.mxu2 %v411_v3 }
 0x245   :  { %v1697_v29 = vpop.eup %1696  ;;  %v356_v34 = vadd.f32 -0.016096033, %v354_v30 }
 0x246   :  { %v391_v31 = vmul.f32 %v1697_v29, %v374_v25  ;;  %vm396_vm3 = vweird.f32 %v1697_v29  ;;  %477 = vmatpush.msra.mxu2 %v410_v5 }
 0x247   :  { %vm397_vm5 = vmor %vm395_vm4, %vm396_vm3  ;;  %v358_v39 = vmul.f32 %v1563_v51, %v356_v34  ;;  %vm608_vm3 = vcmp.lt.s32.totalorder %v1886_v52, 6  ;;  %vm607_vm4 = vcmp.lt.s32.totalorder %v1889_v53, 6 }
 0x248   :  { %v392_v32 = vsub.f32 1.0, %v391_v31  ;;  %478 = vmatpush.msra.mxu2 %v409_v6 }
 0x24a   :  { %v393_v36 = vmul.f32 %v1697_v29, %v392_v32 }
 0x24c   :  { %v394_v37 = vadd.f32 %v1697_v29, %v393_v36 }
 0x24e   :  { %v398_v42 = vsel %vm397_vm5, %v1697_v29, %v394_v37  ;;  %vm591_vm5 = vcmp.lt.s32.totalorder %v1881_v41, 2 }
 0x24f   :  { %v403_v44 = vsel %vm400_vm15, %v402_v38, %v398_v42  ;;  %vm599_vm15 = vcmp.ge.s32.totalorder %v1889_v53, 2 }
 0x250   :  { %v404_v45 = vmul.f32 %v403_v44, %v358_v39 }
 0x252   :  { %v406_v47 = vadd.f32 1.0, %v404_v45 }
 0x254   :  { %v408_v28 = vmul.f32 %v406_v47, %v324_v46 }
 0x256   :  { %438 = vrot.lane.b32.xlu2 %v408_v28, %s1751_s21  ;;  %v423_v49 = vrot.slane %v408_v28, 7  ;;  %v427_v54 = vrot.slane %v408_v28, 1 }
 0x258   :  { %v428_v55 = vsel %vm249_vm6, %v426_v50, %v427_v54  ;;  %v425_v51 = vsel %vm244_vm9, %v423_v49, %v422_v43  ;;  %v424_v56 = vsel %vm244_vm9, %v422_v43, %v423_v49  ;;  %v429_v40 = vsel %vm249_vm6, %v427_v54, %v426_v50 }
 0x259   :  { %v432_v48 = vsel %vm260_vm8, %v428_v55, 0.0  ;;  %v433_v57 = vsel %vm261_vm7, %v429_v40, 0.0  ;;  %v430_v8 = vsel %vm252_vm10, %v425_v51, 0.0  ;;  %v431_v13 = vsel %vm253_vm14, %v424_v56, 0.0 }
 0x25a   :  { %444 = vrot.lane.b32.xlu1 %v432_v48, %s1752_s22 }
 0x262   :  { %446 = vrot.lane.b32.xlu1 %v433_v57, %s1752_s22 }
 0x298   :  { %v437_v7 = vpop.permute.xlu2 %436 }
 0x299   :  { %v450_v9 = vsel %vm284_vm11, %v430_v8, %v437_v7 }
 0x2b0   :  { %v439_v12 = vpop.permute.xlu2 %438 }
 0x2b1   :  { %v451_v14 = vsel %vm284_vm11, %v431_v13, %v439_v12 }
 0x2cc   :  { %v445_v10 = vpop.permute.xlu1 %444 }
 0x2cd   :  { %v452_v11 = vsel %vm287_vm12, %v450_v9, %v445_v10 }
 0x2ce   :  { %1564 = vmatmul.msk.f32.vlgmr.msra.gmra.mxu2 %vm293_vm13, %v452_v11 }
 0x2d4   :  { %v447_v15 = vpop.permute.xlu1 %446 }
 0x2d5   :  { %v453_v16 = vsel %vm287_vm12, %v451_v14, %v447_v15 }
 0x2d6   :  { %1565 = vmatmul.msk.f32.gmra.mxu2 %vm293_vm13, %v453_v16 }
 0x351   :  { %v480_v18 = vpop.f32.mrf.mxu2 }
 0x352   :  { %v481_v19 = vadd.f32 %v1682_v17, %v480_v18 }
 0x354   :  { %v2017_v20 = vadd.f32 %v481_v19, %v1850_v26 }
 0x356   :  { %v490_v21 = vmul.f32 0.70710677, %v2017_v20 }
 0x358   :  { %v1566_v23 = vclamps-f32 %v490_v21, 3.832507 }
 0x359   :  { %v483_v25 = vpop.f32.mrf.mxu2 }
 0x35a   :  { %v496_v27 = vmul.f32 %v1566_v23, %v1566_v23  ;;  %v484_v24 = vadd.f32 %v1682_v17, %v483_v25 }
 0x35c   :  { %v2021_v29 = vadd.f32 %v484_v24, %v1857_v35  ;;  %v498_v30 = vmul.f32 -2.7261424e-10, %v496_v27  ;;  %v524_v31 = vmul.f32 -1.45660715e-05, %v496_v27 }
 0x35e   :  { %v491_v32 = vmul.f32 0.70710677, %v2021_v29  ;;  %v500_v33 = vadd.f32 2.7706815e-08, %v498_v30  ;;  %v526_v34 = vadd.f32 -0.00021337405, %v524_v31 }
 0x35f   :  { %v488_v30 = vmul.f32 0.5, %v2017_v20 }
 0x360   :  { %v2024_v36 = vclamps-f32 %v491_v32, 3.832507  ;;  %v502_v22 = vmul.f32 %v500_v33, %v496_v27  ;;  %v528_v26 = vmul.f32 %v526_v34, %v496_v27 }
 0x362   :  { %v497_v37 = vmul.f32 %v2024_v36, %v2024_v36  ;;  %v504_v38 = vadd.f32 -2.101024e-06, %v502_v22  ;;  %v530_v39 = vadd.f32 -0.001682827, %v528_v26 }
 0x364   :  { %v506_v42 = vmul.f32 %v504_v38, %v496_v27  ;;  %v532_v44 = vmul.f32 %v530_v39, %v496_v27  ;;  %v499_v45 = vmul.f32 -2.7261424e-10, %v497_v37  ;;  %v525_v35 = vmul.f32 -1.45660715e-05, %v497_v37 }
 0x366   :  { %v508_v46 = vadd.f32 -5.6925062e-05, %v506_v42  ;;  %v534_v47 = vadd.f32 -0.0073733293, %v532_v44  ;;  %v501_v28 = vadd.f32 2.7706815e-08, %v499_v45 }
 0x367   :  { %v527_v43 = vadd.f32 -0.00021337405, %v525_v35  ;;  %v489_v45 = vmul.f32 0.5, %v2021_v29 }
 0x368   :  { %v510_v49 = vmul.f32 %v508_v46, %v496_v27  ;;  %v536_v50 = vmul.f32 %v534_v47, %v496_v27  ;;  %v503_v54 = vmul.f32 %v501_v28, %v497_v37 }
 0x369   :  { %v529_v55 = vmul.f32 %v527_v43, %v497_v37 }
 0x36a   :  { %v512_v51 = vadd.f32 -0.00073499064, %v510_v49  ;;  %v538_v56 = vadd.f32 -0.014264739, %v536_v50  ;;  %v505_v48 = vadd.f32 -2.101024e-06, %v503_v54 }
 0x36b   :  { %v531_v40 = vadd.f32 -0.001682827, %v529_v55 }
 0x36c   :  { %v514_v57 = vmul.f32 %v512_v51, %v496_v27  ;;  %1698 = vrcp.f32 %v538_v56  ;;  %v507_v58 = vmul.f32 %v505_v48, %v497_v37  ;;  %v551_v9 = vand.u32 2147483648, %v538_v56  ;;  %v1579_v48 = vld [vmem:[%s2515_s4 + $0xb8] sm:$0xff] }
 0x36d   :  { %v533_v59 = vmul.f32 %v531_v40, %v497_v37  ;;  %v549_v12 = vand.u32 2147483647, %v538_v56  ;;  %vm545_vm7 = vweird.f32 %v538_v56  ;;  %v1578_v40 = vld [vmem:[%s2515_s4 + $0xb0] sm:$0xff]  ;;  %648 = vmatpush.msra.mxu3 %v1579_v48 }
 0x36e   :  { %v516_v60 = vadd.f32 -0.0029546, %v514_v57  ;;  %v509_v61 = vadd.f32 -5.6925062e-05, %v507_v58  ;;  %v552_v15 = vor.u32 1.1754944e-38, %v551_v9  ;;  %v1577_v57 = vld [vmem:[%s2515_s4 + $0xa8] sm:$0xff] }
 0x36f   :  { %v535_v62 = vadd.f32 -0.0073733293, %v533_v59  ;;  %vm550_vm9 = vcmp.eq.f32.partialorder %v549_v12, 8.507059e+37  ;;  %649 = vmatpush.msra.mxu3 %v1578_v40  ;;  %v1576_v58 = vld [vmem:[%s2515_s4 + $0xa0] sm:$0xff]  ;;  %v1575_v59 = vld [vmem:[%s2515_s4 + $0x98] sm:$0xff] }
 0x370   :  { %v511_v63 = vmul.f32 %v509_v61, %v497_v37  ;;  %v518_v2 = vmul.f32 %v516_v60, %v496_v27  ;;  %v1574_v60 = vld [vmem:[%s2515_s4 + $0x90] sm:$0xff]  ;;  %v1573_v61 = vld [vmem:[%s2515_s4 + $0x88] sm:$0xff] }
 0x371   :  { %v537_v0 = vmul.f32 %v535_v62, %v497_v37  ;;  %650 = vmatpush.msra.mxu3 %v1577_v57  ;;  %v1572_v62 = vld [vmem:[%s2515_s4 + $0x80] sm:$0xff] }
 0x372   :  { %v1699_v1 = vpop.eup %1698  ;;  %v513_v5 = vadd.f32 -0.00073499064, %v511_v63  ;;  %v520_v10 = vadd.f32 -0.016096033, %v518_v2  ;;  %v1571_v63 = vld [vmem:[%s2515_s4 + $0x78] sm:$0xff]  ;;  %v1568_v2 = vld [vmem:[%s2515_s4 + $0x60] sm:$0xff] }
 0x373   :  { %v541_v3 = vmul.f32 %v1699_v1, %v538_v56  ;;  %v539_v6 = vadd.f32 -0.014264739, %v537_v0  ;;  %vm546_vm6 = vweird.f32 %v1699_v1  ;;  %651 = vmatpush.msra.mxu3 %v1576_v58  ;;  %v1570_v0 = vld [vmem:[%s2515_s4 + $0x70] sm:$0xff] }
 0x374   :  { %v515_v8 = vmul.f32 %v513_v5, %v497_v37  ;;  %vm547_vm8 = vmor %vm545_vm7, %vm546_vm6  ;;  %v522_v17 = vmul.f32 %v1566_v23, %v520_v10  ;;  %vm600_vm6 = vcmp.ge.s32.totalorder %v1886_v52, 2 }
 0x375   :  { %v542_v7 = vsub.f32 1.0, %v541_v3  ;;  %1700 = vrcp.f32 %v539_v6  ;;  %v566_v32 = vand.u32 2147483648, %v539_v6  ;;  %v564_v22 = vand.u32 2147483647, %v539_v6  ;;  %652 = vmatpush.msra.mxu3 %v1575_v59 }
 0x376   :  { %v517_v13 = vadd.f32 -0.0029546, %v515_v8  ;;  %vm560_vm14 = vweird.f32 %v539_v6 }
 0x377   :  { %v543_v11 = vmul.f32 %v1699_v1, %v542_v7  ;;  %v567_v23 = vor.u32 1.1754944e-38, %v566_v32  ;;  %vm565_vm1 = vcmp.eq.f32.partialorder %v564_v22, 8.507059e+37  ;;  %653 = vmatpush.msra.mxu3 %v1574_v60 }
 0x378   :  { %v519_v21 = vmul.f32 %v517_v13, %v497_v37 }
 0x379   :  { %v544_v14 = vadd.f32 %v1699_v1, %v543_v11  ;;  %654 = vmatpush.msra.mxu3 %v1573_v61 }
 0x37a   :  { %v521_v33 = vadd.f32 -0.016096033, %v519_v21 }
 0x37b   :  { %v1701_v16 = vpop.eup %1700  ;;  %v548_v18 = vsel %vm547_vm8, %v1699_v1, %v544_v14  ;;  %655 = vmatpush.msra.mxu3 %v1572_v62  ;;  %v1569_v1 = vld [vmem:[%s2515_s4 + $0x68] sm:$0xff]  ;;  %v1683_v14 = vld [vmem:[%s2516_s5 + $0x1] ss:$0 sm:$0xff] }
 0x37c   :  { %v553_v19 = vsel %vm550_vm9, %v552_v15, %v548_v18  ;;  %v556_v25 = vmul.f32 %v1701_v16, %v539_v6  ;;  %vm561_vm10 = vweird.f32 %v1701_v16  ;;  %v523_v37 = vmul.f32 %v2024_v36, %v521_v33 }
 0x37d   :  { %v554_v27 = vmul.f32 %v553_v19, %v522_v17  ;;  %vm562_vm0 = vmor %vm560_vm14, %vm561_vm10  ;;  %656 = vmatpush.msra.mxu3 %v1571_v63 }
 0x37e   :  { %v557_v24 = vsub.f32 1.0, %v556_v25 }
 0x37f   :  { %v570_v31 = vadd.f32 1.0, %v554_v27  ;;  %657 = vmatpush.msra.mxu3 %v1570_v0 }
 0x380   :  { %v558_v34 = vmul.f32 %v1701_v16, %v557_v24 }
 0x381   :  { %v572_v26 = vmul.f32 %v570_v31, %v488_v30  ;;  %658 = vmatpush.msra.mxu3 %v1569_v1 }
 0x382   :  { %v559_v38 = vadd.f32 %v1701_v16, %v558_v34 }
 0x383   :  { %617 = vrot.lane.b32.xlu2 %v572_v26, %s1751_s21  ;;  %v589_v47 = vrot.slane %v572_v26, 6  ;;  %v594_v28 = vrot.slane %v572_v26, 2  ;;  %659 = vmatpush.msra.mxu3 %v1568_v2 }
 0x384   :  { %v563_v39 = vsel %vm562_vm0, %v1701_v16, %v559_v38 }
 0x385   :  { %v568_v42 = vsel %vm565_vm1, %v567_v23, %v563_v39 }
 0x386   :  { %v569_v44 = vmul.f32 %v568_v42, %v523_v37 }
 0x388   :  { %v571_v35 = vadd.f32 1.0, %v569_v44 }
 0x38a   :  { %v573_v46 = vmul.f32 %v571_v35, %v489_v45 }
 0x38c   :  { %619 = vrot.lane.b32.xlu1 %v573_v46, %s1751_s21  ;;  %v590_v36 = vrot.slane %v573_v46, 6  ;;  %v595_v43 = vrot.slane %v573_v46, 2 }
 0x38e   :  { %v598_v49 = vsel %vm596_vm2, %v595_v43, %v594_v28  ;;  %v597_v50 = vsel %vm596_vm2, %v594_v28, %v595_v43  ;;  %v593_v54 = vsel %vm591_vm5, %v590_v36, %v589_v47  ;;  %v592_v55 = vsel %vm591_vm5, %v589_v47, %v590_v36 }
 0x38f   :  { %v614_v51 = vsel %vm608_vm3, %v598_v49, 0.0  ;;  %v613_v56 = vsel %vm607_vm4, %v597_v50, 0.0  ;;  %v605_v5 = vsel %vm599_vm15, %v593_v54, 0.0  ;;  %v606_v10 = vsel %vm600_vm6, %v592_v55, 0.0 }
 0x390   :  { %627 = vrot.lane.b32.xlu2 %v614_v51, %s1752_s22  ;;  %625 = vrot.lane.b32.xlu0 %v613_v56, %s1752_s22 }
 0x3dd   :  { %v618_v3 = vpop.permute.xlu2 %617 }
 0x3de   :  { %v631_v6 = vsel %vm284_vm11, %v605_v5, %v618_v3 }
 0x3ea   :  { %v628_v12 = vpop.permute.xlu2 %627 }
 0x3fe   :  { %v620_v9 = vpop.permute.xlu1 %619 }
 0x3ff   :  { %v632_v11 = vsel %vm284_vm11, %v606_v10, %v620_v9 }
 0x400   :  { %v634_v13 = vsel %vm287_vm12, %v632_v11, %v628_v12 }
 0x402   :  { %v626_v7 = vpop.permute.xlu0 %625 }
 0x403   :  { %v633_v8 = vsel %vm287_vm12, %v631_v6, %v626_v7 }
 0x404   :  { %1581 = vmatmul.msk.f32.vlgmr.msra.gmra.mxu3 %vm293_vm13, %v633_v8 }
 0x40c   :  { %1582 = vmatmul.msk.f32.gmra.mxu3 %vm293_vm13, %v634_v13 }
 0x487   :  { %v661_v15 = vpop.f32.mrf.mxu3 }
 0x488   :  { %v2102_v16 = vadd.f32 %v1683_v14, %v661_v15 }
 0x48a   :  { %v669_v17 = vmul.f32 0.70710677, %v2102_v16 }
 0x48c   :  { %v1583_v18 = vclamps-f32 %v669_v17, 3.832507 }
 0x48e   :  { %v675_v19 = vmul.f32 %v1583_v18, %v1583_v18 }
 0x48f   :  { %v664_v21 = vpop.f32.mrf.mxu3 }
 0x490   :  { %v677_v25 = vmul.f32 -2.7261424e-10, %v675_v19  ;;  %v2105_v27 = vadd.f32 %v1683_v14, %v664_v21  ;;  %v703_v24 = vmul.f32 -1.45660715e-05, %v675_v19 }
 0x492   :  { %v679_v30 = vadd.f32 2.7706815e-08, %v677_v25  ;;  %v670_v31 = vmul.f32 0.70710677, %v2105_v27  ;;  %v705_v32 = vadd.f32 -0.00021337405, %v703_v24 }
 0x494   :  { %v681_v33 = vmul.f32 %v679_v30, %v675_v19  ;;  %v2108_v34 = vclamps-f32 %v670_v31, 3.832507  ;;  %v707_v22 = vmul.f32 %v705_v32, %v675_v19  ;;  %v667_v30 = vmul.f32 0.5, %v2102_v16 }
 0x495   :  { %v668_v16 = vmul.f32 0.5, %v2105_v27 }
 0x496   :  { %v683_v26 = vadd.f32 -2.101024e-06, %v681_v33  ;;  %v676_v38 = vmul.f32 %v2108_v34, %v2108_v34  ;;  %v709_v23 = vadd.f32 -0.001682827, %v707_v22 }
 0x498   :  { %v685_v37 = vmul.f32 %v683_v26, %v675_v19  ;;  %v678_v39 = vmul.f32 -2.7261424e-10, %v676_v38  ;;  %v704_v42 = vmul.f32 -1.45660715e-05, %v676_v38  ;;  %v711_v44 = vmul.f32 %v709_v23, %v675_v19 }
 0x49a   :  { %v687_v45 = vadd.f32 -5.6925062e-05, %v685_v37  ;;  %v680_v35 = vadd.f32 2.7706815e-08, %v678_v39  ;;  %v706_v46 = vadd.f32 -0.00021337405, %v704_v42 }
 0x49b   :  { %v713_v47 = vadd.f32 -0.0073733293, %v711_v44 }
 0x49c   :  { %v689_v36 = vmul.f32 %v687_v45, %v675_v19  ;;  %v682_v28 = vmul.f32 %v680_v35, %v676_v38  ;;  %v708_v43 = vmul.f32 %v706_v46, %v676_v38 }
 0x49d   :  { %v715_v49 = vmul.f32 %v713_v47, %v675_v19 }
 0x49e   :  { %v691_v50 = vadd.f32 -0.00073499064, %v689_v36  ;;  %v684_v54 = vadd.f32 -2.101024e-06, %v682_v28  ;;  %v710_v55 = vadd.f32 -0.001682827, %v708_v43 }
 0x49f   :  { %v717_v51 = vadd.f32 -0.014264739, %v715_v49 }
 0x4a0   :  { %v693_v56 = vmul.f32 %v691_v50, %v675_v19  ;;  %v686_v48 = vmul.f32 %v684_v54, %v676_v38  ;;  %v712_v40 = vmul.f32 %v710_v55, %v676_v38  ;;  %v1596_v55 = vld [vmem:[%s2517_s6 + $0xb8] sm:$0xff] }
 0x4a1   :  { %1702 = vrcp.f32 %v717_v51  ;;  %v728_v6 = vand.u32 2147483647, %v717_v51  ;;  %v730_v7 = vand.u32 2147483648, %v717_v51  ;;  %vm724_vm8 = vweird.f32 %v717_v51  ;;  %813 = vmatpush.msrb.mxu0 %v1596_v55 }
 0x4a2   :  { %v688_v57 = vadd.f32 -5.6925062e-05, %v686_v48  ;;  %v714_v58 = vadd.f32 -0.0073733293, %v712_v40  ;;  %v695_v59 = vadd.f32 -0.0029546, %v693_v56 }
 0x4a3   :  { %vm729_vm10 = vcmp.eq.f32.partialorder %v728_v6, 8.507059e+37  ;;  %v731_v13 = vor.u32 1.1754944e-38, %v730_v7  ;;  %v1594_v56 = vld [vmem:[%s2517_s6 + $0xa8] sm:$0xff]  ;;  %v1593_v48 = vld [vmem:[%s2517_s6 + $0xa0] sm:$0xff]  ;;  %v1592_v40 = vld [vmem:[%s2517_s6 + $0x98] sm:$0xff] }
 0x4a4   :  { %v690_v60 = vmul.f32 %v688_v57, %v676_v38  ;;  %v716_v61 = vmul.f32 %v714_v58, %v676_v38  ;;  %v697_v1 = vmul.f32 %v695_v59, %v675_v19  ;;  %v1591_v57 = vld [vmem:[%s2517_s6 + $0x90] sm:$0xff]  ;;  %v1590_v58 = vld [vmem:[%s2517_s6 + $0x88] sm:$0xff]  ;;  %v1589_v59 = vld [vmem:[%s2517_s6 + $0x80] sm:$0xff] }
 0x4a6   :  { %v692_v62 = vadd.f32 -0.00073499064, %v690_v60  ;;  %v718_v63 = vadd.f32 -0.014264739, %v716_v61  ;;  %v699_v8 = vadd.f32 -0.016096033, %v697_v1 }
 0x4a7   :  { %v1703_v0 = vpop.eup %1702  ;;  %v1588_v60 = vld [vmem:[%s2517_s6 + $0x78] sm:$0xff]  ;;  %v1587_v61 = vld [vmem:[%s2517_s6 + $0x70] sm:$0xff] }
 0x4a8   :  { %v694_v2 = vmul.f32 %v692_v62, %v676_v38  ;;  %v720_v3 = vmul.f32 %v1703_v0, %v717_v51  ;;  %1704 = vrcp.f32 %v718_v63  ;;  %vm725_vm7 = vweird.f32 %v1703_v0  ;;  %v1595_v51 = vld [vmem:[%s2517_s6 + $0xb0] sm:$0xff]  ;;  %v1586_v62 = vld [vmem:[%s2517_s6 + $0x68] sm:$0xff] }
 0x4a9   :  { %vm726_vm9 = vmor %vm724_vm8, %vm725_vm7  ;;  %v701_v14 = vmul.f32 %v1583_v18, %v699_v8  ;;  %v743_v31 = vand.u32 2147483647, %v718_v63  ;;  %v745_v32 = vand.u32 2147483648, %v718_v63  ;;  %vm739_vm0 = vweird.f32 %v718_v63  ;;  %814 = vmatpush.msrb.mxu0 %v1595_v51 }
 0x4aa   :  { %v721_v5 = vsub.f32 1.0, %v720_v3  ;;  %v696_v9 = vadd.f32 -0.0029546, %v694_v2 }
 0x4ab   :  { %v746_v39 = vor.u32 1.1754944e-38, %v745_v32  ;;  %vm744_vm7 = vcmp.eq.f32.partialorder %v743_v31, 8.507059e+37  ;;  %815 = vmatpush.msrb.mxu0 %v1594_v56 }
 0x4ac   :  { %v722_v10 = vmul.f32 %v1703_v0, %v721_v5  ;;  %v698_v15 = vmul.f32 %v696_v9, %v676_v38 }
 0x4ad   :  { %816 = vmatpush.msrb.mxu0 %v1593_v48 }
 0x4ae   :  { %v723_v11 = vadd.f32 %v1703_v0, %v722_v10  ;;  %v1705_v12 = vpop.eup %1704  ;;  %v700_v33 = vadd.f32 -0.016096033, %v698_v15 }
 0x4af   :  { %v735_v19 = vmul.f32 %v1705_v12, %v718_v63  ;;  %vm740_vm14 = vweird.f32 %v1705_v12  ;;  %817 = vmatpush.msrb.mxu0 %v1592_v40  ;;  %v1585_v63 = vld [vmem:[%s2517_s6 + $0x60] sm:$0xff] }
 0x4b0   :  { %v727_v17 = vsel %vm726_vm9, %v1703_v0, %v723_v11  ;;  %vm741_vm1 = vmor %vm739_vm0, %vm740_vm14  ;;  %v702_v18 = vmul.f32 %v2108_v34, %v700_v33  ;;  %v1684_v11 = vld [vmem:[%s2518_s7 + $0x1] ss:$0 sm:$0xff]  ;;  %vm949_vm14 = vcmp.lt.s32.totalorder %v1886_v52, 4  ;;  %vm948_vm0 = vcmp.lt.s32.totalorder %v1889_v53, 4 }
 0x4b1   :  { %v732_v21 = vsel %vm729_vm10, %v731_v13, %v727_v17  ;;  %v736_v24 = vsub.f32 1.0, %v735_v19  ;;  %818 = vmatpush.msrb.mxu0 %v1591_v57  ;;  %v1613_v57 = vld [vmem:[%s2515_s4 + $0x118] sm:$0xff]  ;;  %vm937_vm10 = vcmp.lt.s32.totalorder %v1881_v41, 4  ;;  %v1629_v41 = vld [vmem:[%s2517_s6 + $0x110] sm:$0xff] }
 0x4b2   :  { %v733_v25 = vmul.f32 %v732_v21, %v701_v14  ;;  %989 = vmatpush.msrb.mxu1 %v1613_v57 }
 0x4b3   :  { %v737_v26 = vmul.f32 %v1705_v12, %v736_v24  ;;  %819 = vmatpush.msrb.mxu0 %v1590_v58  ;;  %v1612_v58 = vld [vmem:[%s2515_s4 + $0x110] sm:$0xff] }
 0x4b4   :  { %v749_v22 = vadd.f32 1.0, %v733_v25  ;;  %990 = vmatpush.msrb.mxu1 %v1612_v58 }
 0x4b5   :  { %v738_v37 = vadd.f32 %v1705_v12, %v737_v26  ;;  %820 = vmatpush.msrb.mxu0 %v1589_v59 }
 0x4b6   :  { %v751_v23 = vmul.f32 %v749_v22, %v667_v30 }
 0x4b7   :  { %v742_v38 = vsel %vm741_vm1, %v1705_v12, %v738_v37  ;;  %821 = vmatpush.msrb.mxu0 %v1588_v60  ;;  %vm940_vm1 = vcmp.ge.s32.totalorder %v1889_v53, 4  ;;  %v1173_v53 = vld [vmem:[%s2519_s8 + $0x10] sm:$0xff] }
 0x4b8   :  { %782 = vrot.lane.b32.xlu0 %v751_v23, %s1751_s21  ;;  %v747_v42 = vsel %vm744_vm7, %v746_v39, %v742_v38  ;;  %v768_v46 = vrot.slane %v751_v23, 6  ;;  %v772_v36 = vrot.slane %v751_v23, 2  ;;  %vm941_vm7 = vcmp.ge.s32.totalorder %v1886_v52, 4  ;;  %v1171_v52 = vld [vmem:[%s2519_s8] sm:$0xff] }
 0x4b9   :  { %v748_v44 = vmul.f32 %v747_v42, %v702_v18  ;;  %822 = vmatpush.msrb.mxu0 %v1587_v61 }
 0x4bb   :  { %v750_v45 = vadd.f32 1.0, %v748_v44  ;;  %823 = vmatpush.msrb.mxu0 %v1586_v62  ;;  %v1611_v62 = vld [vmem:[%s2515_s4 + $0x108] sm:$0xff] }
 0x4bc   :  { %991 = vmatpush.msrb.mxu1 %v1611_v62 }
 0x4bd   :  { %v752_v35 = vmul.f32 %v750_v45, %v668_v16  ;;  %824 = vmatpush.msrb.mxu0 %v1585_v63 }
 0x4bf   :  { %784 = vrot.lane.b32.xlu2 %v752_v35, %s1751_s21  ;;  %v769_v47 = vrot.slane %v752_v35, 6  ;;  %v773_v28 = vrot.slane %v752_v35, 2 }
 0x4c1   :  { %v775_v43 = vsel %vm596_vm2, %v773_v28, %v772_v36  ;;  %v774_v34 = vsel %vm596_vm2, %v772_v36, %v773_v28  ;;  %v770_v49 = vsel %vm591_vm5, %v768_v46, %v769_v47  ;;  %v771_v27 = vsel %vm591_vm5, %v769_v47, %v768_v46 }
 0x4c2   :  { %v779_v50 = vsel %vm608_vm3, %v775_v43, 0.0  ;;  %v778_v54 = vsel %vm607_vm4, %v774_v34, 0.0  ;;  %v776_v1 = vsel %vm599_vm15, %v771_v27, 0.0  ;;  %v777_v8 = vsel %vm600_vm6, %v770_v49, 0.0 }
 0x4c3   :  { %792 = vrot.lane.b32.xlu0 %v779_v50, %s1752_s22  ;;  %790 = vrot.lane.b32.xlu1 %v778_v54, %s1752_s22 }
 0x519   :  { %v785_v6 = vpop.permute.xlu2 %784 }
 0x51a   :  { %v797_v9 = vsel %vm284_vm11, %v777_v8, %v785_v6  ;;  %v1609_v8 = vld [vmem:[%s2515_s4 + $0xf8] sm:$0xff] }
 0x52a   :  { %v783_v0 = vpop.permute.xlu0 %782 }
 0x52b   :  { %v796_v2 = vsel %vm284_vm11, %v776_v1, %v783_v0 }
 0x535   :  { %v791_v3 = vpop.permute.xlu1 %790  ;;  %v793_v7 = vpop.permute.xlu0 %792 }
 0x536   :  { %v798_v5 = vsel %vm287_vm12, %v796_v2, %v791_v3  ;;  %v799_v10 = vsel %vm287_vm12, %v797_v9, %v793_v7  ;;  %v1610_v3 = vld [vmem:[%s2515_s4 + $0x100] sm:$0xff] }
 0x537   :  { %1598 = vmatmul.msk.f32.vlgmr.msrb.gmra.mxu0 %vm293_vm13, %v798_v5  ;;  %992 = vmatpush.msrb.mxu1 %v1610_v3  ;;  %v1685_v3 = vld [vmem:[%s2516_s5 + $0x2] ss:$0 sm:$0xff] }
 0x539   :  { %993 = vmatpush.msrb.mxu1 %v1609_v8 }
 0x53f   :  { %1599 = vmatmul.msk.f32.gmra.mxu0 %vm293_vm13, %v799_v10 }
 0x5b4   :  { %v826_v12 = vpop.f32.mrf.mxu0 }
 0x5b5   :  { %v827_v13 = vadd.f32 %v1684_v11, %v826_v12 }
 0x5b7   :  { %v2181_v14 = vadd.f32 %v827_v13, %v2017_v20 }
 0x5b9   :  { %v836_v15 = vmul.f32 0.70710677, %v2181_v14 }
 0x5bb   :  { %v2184_v17 = vclamps-f32 %v836_v15, 3.832507 }
 0x5bc   :  { %v829_v19 = vpop.f32.mrf.mxu0 }
 0x5bd   :  { %v842_v21 = vmul.f32 %v2184_v17, %v2184_v17  ;;  %v830_v25 = vadd.f32 %v1684_v11, %v829_v19 }
 0x5bf   :  { %v2189_v24 = vadd.f32 %v830_v25, %v2021_v29  ;;  %v844_v30 = vmul.f32 -2.7261424e-10, %v842_v21  ;;  %v870_v31 = vmul.f32 -1.45660715e-05, %v842_v21 }
 0x5c1   :  { %v837_v32 = vmul.f32 0.70710677, %v2189_v24  ;;  %v846_v33 = vadd.f32 2.7706815e-08, %v844_v30  ;;  %v872_v22 = vadd.f32 -0.00021337405, %v870_v31 }
 0x5c3   :  { %v2192_v20 = vclamps-f32 %v837_v32, 3.832507  ;;  %v848_v26 = vmul.f32 %v846_v33, %v842_v21  ;;  %v874_v23 = vmul.f32 %v872_v22, %v842_v21 }
 0x5c5   :  { %v843_v37 = vmul.f32 %v2192_v20, %v2192_v20  ;;  %v850_v39 = vadd.f32 -2.101024e-06, %v848_v26  ;;  %v876_v18 = vadd.f32 -0.001682827, %v874_v23  ;;  %v834_v26 = vmul.f32 0.5, %v2181_v14 }
 0x5c7   :  { %v852_v38 = vmul.f32 %v850_v39, %v842_v21  ;;  %v878_v42 = vmul.f32 %v876_v18, %v842_v21  ;;  %v845_v44 = vmul.f32 -2.7261424e-10, %v843_v37  ;;  %v871_v29 = vmul.f32 -1.45660715e-05, %v843_v37 }
 0x5c9   :  { %v854_v16 = vadd.f32 -5.6925062e-05, %v852_v38  ;;  %v880_v45 = vadd.f32 -0.0073733293, %v878_v42  ;;  %v847_v35 = vadd.f32 2.7706815e-08, %v845_v44 }
 0x5ca   :  { %v873_v46 = vadd.f32 -0.00021337405, %v871_v29 }
 0x5cb   :  { %v856_v47 = vmul.f32 %v854_v16, %v842_v21  ;;  %v882_v36 = vmul.f32 %v880_v45, %v842_v21  ;;  %v849_v28 = vmul.f32 %v847_v35, %v843_v37 }
 0x5cc   :  { %v875_v43 = vmul.f32 %v873_v46, %v843_v37  ;;  %v835_v46 = vmul.f32 0.5, %v2189_v24 }
 0x5cd   :  { %v858_v34 = vadd.f32 -0.00073499064, %v856_v47  ;;  %v884_v49 = vadd.f32 -0.014264739, %v882_v36  ;;  %v851_v27 = vadd.f32 -2.101024e-06, %v849_v28 }
 0x5ce   :  { %v877_v50 = vadd.f32 -0.001682827, %v875_v43 }
 0x5cf   :  { %v860_v54 = vmul.f32 %v858_v34, %v842_v21  ;;  %1706 = vrcp.f32 %v884_v49  ;;  %v853_v55 = vmul.f32 %v851_v27, %v843_v37  ;;  %v897_v7 = vand.u32 2147483648, %v884_v49 }
 0x5d0   :  { %v879_v51 = vmul.f32 %v877_v50, %v843_v37  ;;  %v895_v11 = vand.u32 2147483647, %v884_v49  ;;  %vm891_vm3 = vweird.f32 %v884_v49  ;;  %v1608_v50 = vld [vmem:[%s2515_s4 + $0xf0] sm:$0xff] }
 0x5d1   :  { %v862_v56 = vadd.f32 -0.0029546, %v860_v54  ;;  %v855_v48 = vadd.f32 -5.6925062e-05, %v853_v55  ;;  %v898_v15 = vor.u32 1.1754944e-38, %v897_v7  ;;  %v1607_v54 = vld [vmem:[%s2515_s4 + $0xe8] sm:$0xff]  ;;  %994 = vmatpush.msrb.mxu1 %v1608_v50 }
 0x5d2   :  { %v881_v40 = vadd.f32 -0.0073733293, %v879_v51  ;;  %vm896_vm5 = vcmp.eq.f32.partialorder %v895_v11, 8.507059e+37  ;;  %v1606_v55 = vld [vmem:[%s2515_s4 + $0xe0] sm:$0xff]  ;;  %v1605_v51 = vld [vmem:[%s2515_s4 + $0xd8] sm:$0xff] }
 0x5d3   :  { %v857_v59 = vmul.f32 %v855_v48, %v843_v37  ;;  %v864_v63 = vmul.f32 %v862_v56, %v842_v21  ;;  %995 = vmatpush.msrb.mxu1 %v1607_v54  ;;  %v1604_v56 = vld [vmem:[%s2515_s4 + $0xd0] sm:$0xff]  ;;  %v1603_v48 = vld [vmem:[%s2515_s4 + $0xc8] sm:$0xff] }
 0x5d4   :  { %v883_v60 = vmul.f32 %v881_v40, %v843_v37  ;;  %v1602_v40 = vld [vmem:[%s2515_s4 + $0xc0] sm:$0xff] }
 0x5d5   :  { %v1707_v61 = vpop.eup %1706  ;;  %v859_v1 = vadd.f32 -0.00073499064, %v857_v59  ;;  %v866_v9 = vadd.f32 -0.016096033, %v864_v63  ;;  %996 = vmatpush.msrb.mxu1 %v1606_v55 }
 0x5d6   :  { %v887_v0 = vmul.f32 %v1707_v61, %v884_v49  ;;  %v885_v2 = vadd.f32 -0.014264739, %v883_v60  ;;  %vm892_vm2 = vweird.f32 %v1707_v61 }
 0x5d7   :  { %v861_v6 = vmul.f32 %v859_v1, %v843_v37  ;;  %vm893_vm4 = vmor %vm891_vm3, %vm892_vm2  ;;  %v868_v21 = vmul.f32 %v2184_v17, %v866_v9  ;;  %997 = vmatpush.msrb.mxu1 %v1605_v51 }
 0x5d8   :  { %v888_v5 = vsub.f32 1.0, %v887_v0  ;;  %1708 = vrcp.f32 %v885_v2  ;;  %v912_v39 = vand.u32 2147483648, %v885_v2  ;;  %v910_v42 = vand.u32 2147483647, %v885_v2 }
 0x5d9   :  { %v863_v12 = vadd.f32 -0.0029546, %v861_v6  ;;  %vm906_vm6 = vweird.f32 %v885_v2  ;;  %998 = vmatpush.msrb.mxu1 %v1604_v56 }
 0x5da   :  { %v889_v10 = vmul.f32 %v1707_v61, %v888_v5  ;;  %v913_v17 = vor.u32 1.1754944e-38, %v912_v39  ;;  %vm911_vm9 = vcmp.eq.f32.partialorder %v910_v42, 8.507059e+37 }
 0x5db   :  { %v865_v31 = vmul.f32 %v863_v12, %v843_v37  ;;  %999 = vmatpush.msrb.mxu1 %v1603_v48 }
 0x5dc   :  { %v890_v13 = vadd.f32 %v1707_v61, %v889_v10 }
 0x5dd   :  { %v867_v18 = vadd.f32 -0.016096033, %v865_v31  ;;  %1000 = vmatpush.msrb.mxu1 %v1602_v40 }
 0x5de   :  { %v1709_v19 = vpop.eup %1708  ;;  %v894_v25 = vsel %vm893_vm4, %v1707_v61, %v890_v13 }
 0x5df   :  { %v899_v30 = vsel %vm896_vm5, %v898_v15, %v894_v25  ;;  %v902_v32 = vmul.f32 %v1709_v19, %v885_v2  ;;  %vm907_vm15 = vweird.f32 %v1709_v19  ;;  %v869_v37 = vmul.f32 %v2192_v20, %v867_v18 }
 0x5e0   :  { %v900_v33 = vmul.f32 %v899_v30, %v868_v21  ;;  %vm908_vm8 = vmor %vm906_vm6, %vm907_vm15 }
 0x5e1   :  { %v903_v22 = vsub.f32 1.0, %v902_v32 }
 0x5e2   :  { %v916_v23 = vadd.f32 1.0, %v900_v33 }
 0x5e3   :  { %v904_v38 = vmul.f32 %v1709_v19, %v903_v22 }
 0x5e4   :  { %v918_v44 = vmul.f32 %v916_v23, %v834_v26 }
 0x5e5   :  { %v905_v29 = vadd.f32 %v1709_v19, %v904_v38 }
 0x5e6   :  { %958 = vrot.lane.b32.xlu1 %v918_v44, %s1751_s21  ;;  %v935_v28 = vrot.slane %v918_v44, 4 }
 0x5e7   :  { %v909_v16 = vsel %vm908_vm8, %v1709_v19, %v905_v29 }
 0x5e8   :  { %v914_v45 = vsel %vm911_vm9, %v913_v17, %v909_v16 }
 0x5e9   :  { %v915_v35 = vmul.f32 %v914_v45, %v869_v37 }
 0x5eb   :  { %v917_v47 = vadd.f32 1.0, %v915_v35 }
 0x5ed   :  { %v919_v36 = vmul.f32 %v917_v47, %v835_v46 }
 0x5ef   :  { %960 = vrot.lane.b32.xlu0 %v919_v36, %s1751_s21  ;;  %v936_v43 = vrot.slane %v919_v36, 4 }
 0x5f1   :  { %v939_v20 = vsel %vm937_vm10, %v936_v43, %v935_v28  ;;  %v938_v34 = vsel %vm937_vm10, %v935_v28, %v936_v43 }
 0x5f2   :  { %v955_v49 = vsel %vm949_vm14, %v939_v20, 0.0  ;;  %v954_v27 = vsel %vm948_vm0, %v938_v34, 0.0  ;;  %v946_v57 = vsel %vm940_vm1, %v939_v20, 0.0  ;;  %v947_v63 = vsel %vm941_vm7, %v938_v34, 0.0 }
 0x5f3   :  { %968 = vrot.lane.b32.xlu1 %v955_v49, %s1752_s22  ;;  %966 = vrot.lane.b32.xlu2 %v954_v27, %s1752_s22 }
 0x64d   :  { %v967_v59 = vpop.permute.xlu2 %966 }
 0x658   :  { %v959_v58 = vpop.permute.xlu1 %958 }
 0x659   :  { %v972_v60 = vsel %vm284_vm11, %v946_v57, %v959_v58 }
 0x65a   :  { %v974_v61 = vsel %vm287_vm12, %v972_v60, %v967_v59 }
 0x65b   :  { %1615 = vmatmul.msk.f32.vlgmr.msrb.gmra.mxu1 %vm293_vm13, %v974_v61 }
 0x661   :  { %v961_v62 = vpop.permute.xlu0 %960 }
 0x662   :  { %v973_v0 = vsel %vm284_vm11, %v947_v63, %v961_v62 }
 0x665   :  { %v969_v1 = vpop.permute.xlu1 %968 }
 0x666   :  { %v975_v2 = vsel %vm287_vm12, %v973_v0, %v969_v1 }
 0x667   :  { %1616 = vmatmul.msk.f32.gmra.mxu1 %vm293_vm13, %v975_v2 }
 0x6d8   :  { %v1002_v5 = vpop.f32.mrf.mxu1 }
 0x6d9   :  { %v2266_v6 = vadd.f32 %v1685_v3, %v1002_v5 }
 0x6db   :  { %v1010_v7 = vmul.f32 0.70710677, %v2266_v6 }
 0x6dd   :  { %v1617_v8 = vclamps-f32 %v1010_v7, 3.832507 }
 0x6df   :  { %v1016_v9 = vmul.f32 %v1617_v8, %v1617_v8 }
 0x6e1   :  { %v1018_v10 = vmul.f32 -2.7261424e-10, %v1016_v9  ;;  %v1044_v11 = vmul.f32 -1.45660715e-05, %v1016_v9 }
 0x6e3   :  { %v1020_v12 = vadd.f32 2.7706815e-08, %v1018_v10  ;;  %v1046_v13 = vadd.f32 -0.00021337405, %v1044_v11  ;;  %v1008_v10 = vmul.f32 0.5, %v2266_v6 }
 0x6e4   :  { %v1005_v15 = vpop.f32.mrf.mxu1 }
 0x6e5   :  { %v1022_v19 = vmul.f32 %v1020_v12, %v1016_v9  ;;  %v2269_v21 = vadd.f32 %v1685_v3, %v1005_v15  ;;  %v1048_v25 = vmul.f32 %v1046_v13, %v1016_v9 }
 0x6e7   :  { %v1024_v30 = vadd.f32 -2.101024e-06, %v1022_v19  ;;  %v1011_v31 = vmul.f32 0.70710677, %v2269_v21  ;;  %v1050_v32 = vadd.f32 -0.001682827, %v1048_v25 }
 0x6e9   :  { %v1026_v33 = vmul.f32 %v1024_v30, %v1016_v9  ;;  %v2272_v22 = vclamps-f32 %v1011_v31, 3.832507  ;;  %v1052_v26 = vmul.f32 %v1050_v32, %v1016_v9 }
 0x6eb   :  { %v1028_v23 = vadd.f32 -5.6925062e-05, %v1026_v33  ;;  %v1017_v39 = vmul.f32 %v2272_v22, %v2272_v22  ;;  %v1054_v18 = vadd.f32 -0.0073733293, %v1052_v26 }
 0x6ed   :  { %v1030_v38 = vmul.f32 %v1028_v23, %v1016_v9  ;;  %v1019_v42 = vmul.f32 -2.7261424e-10, %v1017_v39  ;;  %v1045_v44 = vmul.f32 -1.45660715e-05, %v1017_v39  ;;  %v1056_v29 = vmul.f32 %v1054_v18, %v1016_v9 }
 0x6ee   :  { %v1009_v18 = vmul.f32 0.5, %v2269_v21  ;;  %v1630_v21 = vld [vmem:[%s2517_s6 + $0x118] sm:$0xff] }
 0x6ef   :  { %v1032_v17 = vadd.f32 -0.00073499064, %v1030_v38  ;;  %v1021_v37 = vadd.f32 2.7706815e-08, %v1019_v42  ;;  %v1047_v16 = vadd.f32 -0.00021337405, %v1045_v44  ;;  %1150 = vmatpush.msrb.mxu2 %v1630_v21 }
 0x6f0   :  { %v1058_v45 = vadd.f32 -0.014264739, %v1056_v29 }
 0x6f1   :  { %v1034_v35 = vmul.f32 %v1032_v17, %v1016_v9  ;;  %v1023_v46 = vmul.f32 %v1021_v37, %v1017_v39  ;;  %v1049_v47 = vmul.f32 %v1047_v16, %v1017_v39  ;;  %1151 = vmatpush.msrb.mxu2 %v1629_v41 }
 0x6f2   :  { %1710 = vrcp.f32 %v1058_v45  ;;  %v1069_v57 = vand.u32 2147483647, %v1058_v45  ;;  %v1071_v58 = vand.u32 2147483648, %v1058_v45  ;;  %vm1065_vm3 = vweird.f32 %v1058_v45 }
 0x6f3   :  { %v1025_v36 = vadd.f32 -2.101024e-06, %v1023_v46  ;;  %v1051_v28 = vadd.f32 -0.001682827, %v1049_v47  ;;  %v1036_v43 = vadd.f32 -0.0029546, %v1034_v35 }
 0x6f4   :  { %v1072_v0 = vor.u32 1.1754944e-38, %v1071_v58  ;;  %vm1070_vm5 = vcmp.eq.f32.partialorder %v1069_v57, 8.507059e+37  ;;  %v1627_v35 = vld [vmem:[%s2517_s6 + $0x100] sm:$0xff]  ;;  %v1626_v46 = vld [vmem:[%s2517_s6 + $0xf8] sm:$0xff]  ;;  %v1625_v47 = vld [vmem:[%s2517_s6 + $0xf0] sm:$0xff] }
 0x6f5   :  { %v1027_v20 = vmul.f32 %v1025_v36, %v1017_v39  ;;  %v1053_v34 = vmul.f32 %v1051_v28, %v1017_v39  ;;  %v1038_v54 = vmul.f32 %v1036_v43, %v1016_v9  ;;  %v1624_v36 = vld [vmem:[%s2517_s6 + $0xe8] sm:$0xff]  ;;  %v1623_v28 = vld [vmem:[%s2517_s6 + $0xe0] sm:$0xff]  ;;  %v1622_v43 = vld [vmem:[%s2517_s6 + $0xd8] sm:$0xff] }
 0x6f7   :  { %v1029_v49 = vadd.f32 -5.6925062e-05, %v1027_v20  ;;  %v1055_v27 = vadd.f32 -0.0073733293, %v1053_v34  ;;  %v1040_v60 = vadd.f32 -0.016096033, %v1038_v54 }
 0x6f8   :  { %v1711_v50 = vpop.eup %1710  ;;  %v1621_v20 = vld [vmem:[%s2517_s6 + $0xd0] sm:$0xff]  ;;  %v1620_v34 = vld [vmem:[%s2517_s6 + $0xc8] sm:$0xff] }
 0x6f9   :  { %v1031_v55 = vmul.f32 %v1029_v49, %v1017_v39  ;;  %v1061_v51 = vmul.f32 %v1711_v50, %v1058_v45  ;;  %v1057_v56 = vmul.f32 %v1055_v27, %v1017_v39  ;;  %vm1066_vm2 = vweird.f32 %v1711_v50  ;;  %v1628_v45 = vld [vmem:[%s2517_s6 + $0x108] sm:$0xff]  ;;  %v1619_v49 = vld [vmem:[%s2517_s6 + $0xc0] sm:$0xff]  ;;  %v1174_v27 = vld [vmem:[%s2519_s8 + $0x18] sm:$0xff] }
 0x6fa   :  { %vm1067_vm4 = vmor %vm1065_vm3, %vm1066_vm2  ;;  %v1042_v1 = vmul.f32 %v1617_v8, %v1040_v60  ;;  %1152 = vmatpush.msrb.mxu2 %v1628_v45  ;;  %1197 = vmatpush.msrb.mxu3 %v1174_v27  ;;  %v1172_v60 = vld [vmem:[%s2519_s8 + $0x8] sm:$0xff] }
 0x6fb   :  { %v1033_v48 = vadd.f32 -0.00073499064, %v1031_v55  ;;  %v1062_v40 = vsub.f32 1.0, %v1061_v51  ;;  %v1059_v59 = vadd.f32 -0.014264739, %v1057_v56 }
 0x6fc   :  { %1153 = vmatpush.msrb.mxu2 %v1627_v35  ;;  %1198 = vmatpush.msrb.mxu3 %v1173_v53 }
 0x6fd   :  { %v1035_v61 = vmul.f32 %v1033_v48, %v1017_v39  ;;  %v1063_v62 = vmul.f32 %v1711_v50, %v1062_v40  ;;  %1712 = vrcp.f32 %v1059_v59  ;;  %v1086_v25 = vand.u32 2147483648, %v1059_v59 }
 0x6fe   :  { %v1084_v8 = vand.u32 2147483647, %v1059_v59  ;;  %vm1080_vm6 = vweird.f32 %v1059_v59  ;;  %1154 = vmatpush.msrb.mxu2 %v1626_v46  ;;  %1199 = vmatpush.msrb.mxu3 %v1172_v60 }
 0x6ff   :  { %v1064_v63 = vadd.f32 %v1711_v50, %v1063_v62  ;;  %v1037_v2 = vadd.f32 -0.0029546, %v1035_v61  ;;  %v1087_v33 = vor.u32 1.1754944e-38, %v1086_v25  ;;  %v1686_v61 = vld [vmem:[%s2518_s7 + $0x2] ss:$0 sm:$0xff] }
 0x700   :  { %vm1085_vm9 = vcmp.eq.f32.partialorder %v1084_v8, 8.507059e+37  ;;  %1155 = vmatpush.msrb.mxu2 %v1625_v47  ;;  %1200 = vmatpush.msrb.mxu3 %v1171_v52 }
 0x701   :  { %v1068_v3 = vsel %vm1067_vm4, %v1711_v50, %v1064_v63  ;;  %v1039_v11 = vmul.f32 %v1037_v2, %v1017_v39 }
 0x702   :  { %v1073_v5 = vsel %vm1070_vm5, %v1072_v0, %v1068_v3  ;;  %1156 = vmatpush.msrb.mxu2 %v1624_v36 }
 0x703   :  { %v1074_v7 = vmul.f32 %v1073_v5, %v1042_v1  ;;  %v1713_v9 = vpop.eup %1712  ;;  %v1041_v30 = vadd.f32 -0.016096033, %v1039_v11 }
 0x704   :  { %v1076_v13 = vmul.f32 %v1713_v9, %v1059_v59  ;;  %vm1081_vm15 = vweird.f32 %v1713_v9  ;;  %1157 = vmatpush.msrb.mxu2 %v1623_v28 }
 0x705   :  { %v1090_v12 = vadd.f32 1.0, %v1074_v7  ;;  %vm1082_vm8 = vmor %vm1080_vm6, %vm1081_vm15  ;;  %v1043_v26 = vmul.f32 %v2272_v22, %v1041_v30 }
 0x706   :  { %v1077_v19 = vsub.f32 1.0, %v1076_v13  ;;  %1158 = vmatpush.msrb.mxu2 %v1622_v43 }
 0x707   :  { %v1092_v15 = vmul.f32 %v1090_v12, %v1008_v10 }
 0x708   :  { %v1078_v31 = vmul.f32 %v1713_v9, %v1077_v19  ;;  %1159 = vmatpush.msrb.mxu2 %v1621_v20 }
 0x709   :  { %1119 = vrot.lane.b32.xlu2 %v1092_v15, %s1751_s21  ;;  %v1109_v44 = vrot.slane %v1092_v15, 4 }
 0x70a   :  { %v1079_v32 = vadd.f32 %v1713_v9, %v1078_v31  ;;  %1160 = vmatpush.msrb.mxu2 %v1620_v34 }
 0x70c   :  { %v1083_v23 = vsel %vm1082_vm8, %v1713_v9, %v1079_v32  ;;  %1161 = vmatpush.msrb.mxu2 %v1619_v49 }
 0x70d   :  { %v1088_v6 = vsel %vm1085_vm9, %v1087_v33, %v1083_v23 }
 0x70e   :  { %v1089_v39 = vmul.f32 %v1088_v6, %v1043_v26 }
 0x710   :  { %v1091_v38 = vadd.f32 1.0, %v1089_v39 }
 0x712   :  { %v1093_v42 = vmul.f32 %v1091_v38, %v1009_v18 }
 0x714   :  { %1121 = vrot.lane.b32.xlu1 %v1093_v42, %s1751_s21  ;;  %v1110_v29 = vrot.slane %v1093_v42, 4 }
 0x716   :  { %v1112_v17 = vsel %vm937_vm10, %v1110_v29, %v1109_v44  ;;  %v1111_v37 = vsel %vm937_vm10, %v1109_v44, %v1110_v29 }
 0x717   :  { %v1116_v22 = vsel %vm949_vm14, %v1112_v17, 0.0  ;;  %v1115_v16 = vsel %vm948_vm0, %v1111_v37, 0.0  ;;  %v1113_v54 = vsel %vm940_vm1, %v1112_v17, 0.0  ;;  %v1114_v40 = vsel %vm941_vm7, %v1111_v37, 0.0 }
 0x718   :  { %1129 = vrot.lane.b32.xlu2 %v1116_v22, %s1752_s22  ;;  %1127 = vrot.lane.b32.xlu0 %v1115_v16, %s1752_s22 }
 0x71c   :  { %1335 = vrot.lane.b32.xlu1 %v1748_v4, %s1752_s22 }
 0x763   :  { %v1120_v50 = vpop.permute.xlu2 %1119 }
 0x764   :  { %v1133_v55 = vsel %vm284_vm11, %v1113_v54, %v1120_v50 }
 0x772   :  { %v1130_v58 = vpop.permute.xlu2 %1129 }
 0x786   :  { %v1122_v48 = vpop.permute.xlu1 %1121 }
 0x787   :  { %v1134_v57 = vsel %vm284_vm11, %v1114_v40, %v1122_v48 }
 0x788   :  { %v1136_v59 = vsel %vm287_vm12, %v1134_v57, %v1130_v58 }
 0x78a   :  { %v1128_v51 = vpop.permute.xlu0 %1127 }
 0x78b   :  { %v1135_v56 = vsel %vm287_vm12, %v1133_v55, %v1128_v51 }
 0x78c   :  { %1632 = vmatmul.msk.f32.vlgmr.msrb.gmra.mxu2 %vm293_vm13, %v1135_v56 }
 0x794   :  { %1633 = vmatmul.msk.f32.gmra.mxu2 %vm293_vm13, %v1136_v59 }
 0x80f   :  { %v1163_v62 = vpop.f32.mrf.mxu2 }
 0x810   :  { %v1164_v63 = vadd.f32 %v1686_v61, %v1163_v62 }
 0x812   :  { %v2355_v0 = vadd.f32 %v1164_v63, %v2181_v14 }
 0x814   :  { %v1210_v1 = vmul.f32 0.70710677, %v2355_v0  ;;  %1634 = vmatmul.msk.f32.vlgmr.msrb.gmra.mxu3 %vm284_vm11, %v2355_v0 }
 0x816   :  { %v1636_v2 = vclamps-f32 %v1210_v1, 3.832507 }
 0x817   :  { %v1166_v3 = vpop.f32.mrf.mxu2 }
 0x818   :  { %v1216_v5 = vmul.f32 %v1636_v2, %v1636_v2  ;;  %v1167_v7 = vadd.f32 %v1686_v61, %v1166_v3  ;;  %v1208_v3 = vmul.f32 0.5, %v2355_v0 }
 0x81a   :  { %v2361_v9 = vadd.f32 %v1167_v7, %v2189_v24  ;;  %v1218_v10 = vmul.f32 -2.7261424e-10, %v1216_v5  ;;  %v1244_v11 = vmul.f32 -1.45660715e-05, %v1216_v5 }
 0x81c   :  { %v1211_v12 = vmul.f32 0.70710677, %v2361_v9  ;;  %1635 = vmatmul.msk.f32.gmra.mxu3 %vm284_vm11, %v2361_v9  ;;  %v1220_v14 = vadd.f32 2.7706815e-08, %v1218_v10  ;;  %v1246_v13 = vadd.f32 -0.00021337405, %v1244_v11 }
 0x81d   :  { %v1209_v0 = vmul.f32 0.5, %v2361_v9  ;;  %v1647_v9 = vld [vmem:[%s2515_s4 + $0x168] sm:$0xff] }
 0x81e   :  { %v2366_v15 = vclamps-f32 %v1211_v12, 3.832507  ;;  %v1222_v19 = vmul.f32 %v1220_v14, %v1216_v5  ;;  %v1248_v25 = vmul.f32 %v1246_v13, %v1216_v5 }
 0x820   :  { %v1217_v30 = vmul.f32 %v2366_v15, %v2366_v15  ;;  %v1224_v31 = vadd.f32 -2.101024e-06, %v1222_v19  ;;  %v1250_v8 = vadd.f32 -0.001682827, %v1248_v25 }
 0x822   :  { %v1226_v24 = vmul.f32 %v1224_v31, %v1216_v5  ;;  %v1252_v32 = vmul.f32 %v1250_v8, %v1216_v5  ;;  %v1219_v33 = vmul.f32 -2.7261424e-10, %v1217_v30  ;;  %v1245_v26 = vmul.f32 -1.45660715e-05, %v1217_v30 }
 0x824   :  { %v1228_v23 = vadd.f32 -5.6925062e-05, %v1226_v24  ;;  %v1254_v6 = vadd.f32 -0.0073733293, %v1252_v32  ;;  %v1221_v39 = vadd.f32 2.7706815e-08, %v1219_v33 }
 0x825   :  { %v1247_v18 = vadd.f32 -0.00021337405, %v1245_v26  ;;  %v1648_v32 = vld [vmem:[%s2515_s4 + $0x170] sm:$0xff]  ;;  %v1646_v33 = vld [vmem:[%s2515_s4 + $0x160] sm:$0xff]  ;;  %v1645_v26 = vld [vmem:[%s2515_s4 + $0x158] sm:$0xff] }
 0x826   :  { %v1230_v38 = vmul.f32 %v1228_v23, %v1216_v5  ;;  %v1256_v42 = vmul.f32 %v1254_v6, %v1216_v5  ;;  %v1223_v44 = vmul.f32 %v1221_v39, %v1217_v30  ;;  %v1644_v23 = vld [vmem:[%s2515_s4 + $0x150] sm:$0xff]  ;;  %v1643_v6 = vld [vmem:[%s2515_s4 + $0x148] sm:$0xff]  ;;  %v1642_v39 = vld [vmem:[%s2515_s4 + $0x140] sm:$0xff] }
 0x827   :  { %v1249_v29 = vmul.f32 %v1247_v18, %v1217_v30  ;;  %v1641_v18 = vld [vmem:[%s2515_s4 + $0x138] sm:$0xff] }
 0x828   :  { %v1232_v17 = vadd.f32 -0.00073499064, %v1230_v38  ;;  %v1258_v37 = vadd.f32 -0.014264739, %v1256_v42  ;;  %v1225_v22 = vadd.f32 -2.101024e-06, %v1223_v44 }
 0x829   :  { %v1251_v16 = vadd.f32 -0.001682827, %v1249_v29  ;;  %v1640_v38 = vld [vmem:[%s2515_s4 + $0x130] sm:$0xff]  ;;  %v1639_v42 = vld [vmem:[%s2515_s4 + $0x128] sm:$0xff]  ;;  %v1638_v44 = vld [vmem:[%s2515_s4 + $0x120] sm:$0xff]  ;;  %v1336_v29 = vpop.permute.xlu1 %1335 }
 0x82a   :  { %v1234_v21 = vmul.f32 %v1232_v17, %v1216_v5  ;;  %1714 = vrcp.f32 %v1258_v37  ;;  %v1227_v41 = vmul.f32 %v1225_v22, %v1217_v30  ;;  %v1271_v55 = vand.u32 2147483648, %v1258_v37 }
 0x82b   :  { %v1253_v45 = vmul.f32 %v1251_v16, %v1217_v30  ;;  %v1269_v48 = vand.u32 2147483647, %v1258_v37  ;;  %vm1265_vm14 = vweird.f32 %v1258_v37 }
 0x82c   :  { %v1236_v35 = vadd.f32 -0.0029546, %v1234_v21  ;;  %v1229_v46 = vadd.f32 -5.6925062e-05, %v1227_v41  ;;  %v1272_v58 = vor.u32 1.1754944e-38, %v1271_v55 }
 0x82d   :  { %v1255_v47 = vadd.f32 -0.0073733293, %v1253_v45  ;;  %vm1270_vm1 = vcmp.eq.f32.partialorder %v1269_v48, 8.507059e+37 }
 0x82e   :  { %v1231_v36 = vmul.f32 %v1229_v46, %v1217_v30  ;;  %v1238_v20 = vmul.f32 %v1236_v35, %v1216_v5  ;;  %v1688_v35 = vld [vmem:[%s2516_s5 + $0x3] ss:$0 sm:$0xff] }
 0x82f   :  { %v1257_v28 = vmul.f32 %v1255_v47, %v1217_v30 }
 0x830   :  { %v1715_v43 = vpop.eup %1714  ;;  %v1233_v49 = vadd.f32 -0.00073499064, %v1231_v36  ;;  %v1240_v51 = vadd.f32 -0.016096033, %v1238_v20 }
 0x831   :  { %v1261_v34 = vmul.f32 %v1715_v43, %v1258_v37  ;;  %v1259_v27 = vadd.f32 -0.014264739, %v1257_v28  ;;  %vm1266_vm10 = vweird.f32 %v1715_v43 }
 0x832   :  { %v1235_v54 = vmul.f32 %v1233_v49, %v1217_v30  ;;  %vm1267_vm0 = vmor %vm1265_vm14, %vm1266_vm10  ;;  %v1242_v53 = vmul.f32 %v1636_v2, %v1240_v51 }
 0x833   :  { %v1262_v50 = vsub.f32 1.0, %v1261_v34  ;;  %1716 = vrcp.f32 %v1259_v27  ;;  %v1286_v7 = vand.u32 2147483648, %v1259_v27  ;;  %v1284_v12 = vand.u32 2147483647, %v1259_v27 }
 0x834   :  { %v1237_v40 = vadd.f32 -0.0029546, %v1235_v54  ;;  %vm1280_vm2 = vweird.f32 %v1259_v27 }
 0x835   :  { %v1263_v56 = vmul.f32 %v1715_v43, %v1262_v50  ;;  %v1287_v2 = vor.u32 1.1754944e-38, %v1286_v7  ;;  %vm1285_vm4 = vcmp.eq.f32.partialorder %v1284_v12, 8.507059e+37 }
 0x836   :  { %v1239_v61 = vmul.f32 %v1237_v40, %v1217_v30 }
 0x837   :  { %v1264_v57 = vadd.f32 %v1715_v43, %v1263_v56 }
 0x838   :  { %v1241_v10 = vadd.f32 -0.016096033, %v1239_v61 }
 0x839   :  { %v1717_v59 = vpop.eup %1716  ;;  %v1268_v60 = vsel %vm1267_vm0, %v1715_v43, %v1264_v57 }
 0x83a   :  { %v1273_v52 = vsel %vm1270_vm1, %v1272_v58, %v1268_v60  ;;  %v1276_v62 = vmul.f32 %v1717_v59, %v1259_v27  ;;  %vm1281_vm7 = vweird.f32 %v1717_v59  ;;  %v1243_v19 = vmul.f32 %v2366_v15, %v1241_v10  ;;  %v1649_v15 = vld [vmem:[%s2515_s4 + $0x178] sm:$0xff]  ;;  %s1753_s4 = smov [#allocation2]  }
 0x83b   :  { %v1274_v63 = vmul.f32 %v1273_v52, %v1242_v53  ;;  %vm1282_vm3 = vmor %vm1280_vm2, %vm1281_vm7  ;;  %1358 = vmatpush.msra.mxu0 %v1649_v15  ;;  %s1542_s5 = sshll.u32 %s1753_s4, 4  ;;  %s1543_s5 = int_to_ptr.vmem [resolvable:$true] %s1542_s5 }
 0x83c   :  { %v1277_v1 = vsub.f32 1.0, %v1276_v62 }
 0x83d   :  { %v1290_v5 = vadd.f32 1.0, %v1274_v63  ;;  %1359 = vmatpush.msra.mxu0 %v1648_v32 }
 0x83e   :  { %v1278_v11 = vmul.f32 %v1717_v59, %v1277_v1 }
 0x83f   :  { %v1292_v14 = vmul.f32 %v1290_v5, %v1208_v3  ;;  %1360 = vmatpush.msra.mxu0 %v1647_v9 }
 0x840   :  { %v1279_v13 = vadd.f32 %v1717_v59, %v1278_v11 }
 0x841   :  { %1327 = vrot.lane.b32.xlu0 %v1292_v14, %s1751_s21  ;;  %1361 = vmatpush.msra.mxu0 %v1646_v33  ;;  %v1663_v33 = vld [vmem:[%s2517_s6 + $0x160] sm:$0xff] }
 0x842   :  { %v1283_v25 = vsel %vm1282_vm3, %v1717_v59, %v1279_v13 }
 0x843   :  { %v1288_v30 = vsel %vm1285_vm4, %v1287_v2, %v1283_v25  ;;  %1362 = vmatpush.msra.mxu0 %v1645_v26 }
 0x844   :  { %v1289_v31 = vmul.f32 %v1288_v30, %v1243_v19  ;;  %v1666_v30 = vld [vmem:[%s2517_s6 + $0x178] sm:$0xff] }
 0x845   :  { %1363 = vmatpush.msra.mxu0 %v1644_v23  ;;  %1515 = vmatpush.msra.mxu3 %v1666_v30 }
 0x846   :  { %v1291_v8 = vadd.f32 1.0, %v1289_v31  ;;  %v1665_v31 = vld [vmem:[%s2517_s6 + $0x170] sm:$0xff] }
 0x847   :  { %1364 = vmatpush.msra.mxu0 %v1643_v6  ;;  %1516 = vmatpush.msra.mxu3 %v1665_v31  ;;  %v1662_v6 = vld [vmem:[%s2517_s6 + $0x158] sm:$0xff]  ;;  %v1687_v31 = vld [vmem:[%s2520_s9] ss:$0 sm:$0xff]  ;;  %s1755_s9 = smov 8  }
 0x848   :  { %v1293_v24 = vmul.f32 %v1291_v8, %v1209_v0 }
 0x849   :  { %1337 = vrot.lane.b32.xlu0 %v1748_v4, %s1752_s22  ;;  %1365 = vmatpush.msra.mxu0 %v1642_v39 }
 0x84a   :  { %1329 = vrot.lane.b32.xlu2 %v1293_v24, %s1751_s21  ;;  %v1664_v24 = vld [vmem:[%s2517_s6 + $0x168] sm:$0xff] }
 0x84b   :  { %1366 = vmatpush.msra.mxu0 %v1641_v18  ;;  %1517 = vmatpush.msra.mxu3 %v1664_v24 }
 0x84d   :  { %1367 = vmatpush.msra.mxu0 %v1640_v38  ;;  %1518 = vmatpush.msra.mxu3 %v1663_v33 }
 0x84f   :  { %1368 = vmatpush.msra.mxu0 %v1639_v42  ;;  %1519 = vmatpush.msra.mxu3 %v1662_v6 }
 0x851   :  { %1369 = vmatpush.msra.mxu0 %v1638_v44  ;;  %v1661_v44 = vld [vmem:[%s2517_s6 + $0x150] sm:$0xff] }
 0x852   :  { %1492 = vrot.lane.b32.xlu2 %v1748_v4, %s1752_s22  ;;  %1520 = vmatpush.msra.mxu3 %v1661_v44 }
 0x8a4   :  { %v1330_v16 = vpop.permute.xlu2 %1329 }
 0x8a5   :  { %v1342_v21 = vsel %vm284_vm11, 0.0, %v1330_v16 }
 0x8b3   :  { %v1328_v17 = vpop.permute.xlu0 %1327 }
 0x8b4   :  { %v1341_v37 = vsel %vm284_vm11, 0.0, %v1328_v17  ;;  %v1660_v17 = vld [vmem:[%s2517_s6 + $0x148] sm:$0xff] }
 0x8b5   :  { %v1343_v22 = vsel %vm287_vm12, %v1341_v37, %v1336_v29  ;;  %1521 = vmatpush.msra.mxu3 %v1660_v17 }
 0x8b6   :  { %1651 = vmatmul.msk.f32.vlgmr.msra.gmra.mxu0 %vm293_vm13, %v1343_v22 }
 0x8bb   :  { %v1338_v41 = vpop.permute.xlu0 %1337 }
 0x8bc   :  { %v1344_v45 = vsel %vm287_vm12, %v1342_v21, %v1338_v41 }
 0x8be   :  { %1652 = vmatmul.msk.f32.gmra.mxu0 %vm293_vm13, %v1344_v45  ;;  %v1659_v45 = vld [vmem:[%s2517_s6 + $0x140] sm:$0xff] }
 0x8bf   :  { %1522 = vmatpush.msra.mxu3 %v1659_v45 }
 0x933   :  { %v1371_v46 = vpop.f32.mrf.mxu0 }
 0x934   :  { %v2424_v47 = vadd.f32 %v1688_v35, %v1371_v46  ;;  %v1658_v46 = vld [vmem:[%s2517_s6 + $0x138] sm:$0xff] }
 0x935   :  { %1523 = vmatpush.msra.mxu3 %v1658_v46 }
 0x936   :  { %v1379_v36 = vmul.f32 0.70710677, %v2424_v47 }
 0x938   :  { %v2427_v28 = vclamps-f32 %v1379_v36, 3.832507 }
 0x93a   :  { %v1385_v43 = vmul.f32 %v2427_v28, %v2427_v28 }
 0x93b   :  { %v1374_v20 = vpop.f32.mrf.mxu0 }
 0x93c   :  { %v1387_v34 = vmul.f32 -2.7261424e-10, %v1385_v43  ;;  %v2431_v49 = vadd.f32 %v1688_v35, %v1374_v20  ;;  %v1413_v27 = vmul.f32 -1.45660715e-05, %v1385_v43 }
 0x93e   :  { %v1389_v50 = vadd.f32 2.7706815e-08, %v1387_v34  ;;  %v1380_v54 = vmul.f32 0.70710677, %v2431_v49  ;;  %v1415_v55 = vadd.f32 -0.00021337405, %v1413_v27 }
 0x940   :  { %v1391_v51 = vmul.f32 %v1389_v50, %v1385_v43  ;;  %v2434_v56 = vclamps-f32 %v1380_v54, 3.832507  ;;  %v1417_v48 = vmul.f32 %v1415_v55, %v1385_v43  ;;  %v1657_v54 = vld [vmem:[%s2517_s6 + $0x130] sm:$0xff] }
 0x941   :  { %1524 = vmatpush.msra.mxu3 %v1657_v54 }
 0x942   :  { %v1393_v40 = vadd.f32 -2.101024e-06, %v1391_v51  ;;  %v2438_v57 = vmul.f32 %v2434_v56, %v2434_v56  ;;  %v1419_v58 = vadd.f32 -0.001682827, %v1417_v48 }
 0x944   :  { %v1395_v59 = vmul.f32 %v1393_v40, %v1385_v43  ;;  %v1388_v53 = vmul.f32 -2.7261424e-10, %v2438_v57  ;;  %v1414_v60 = vmul.f32 -1.45660715e-05, %v2438_v57  ;;  %v1421_v52 = vmul.f32 %v1419_v58, %v1385_v43  ;;  %v1656_v40 = vld [vmem:[%s2517_s6 + $0x128] sm:$0xff] }
 0x945   :  { %v1377_v58 = vmul.f32 0.5, %v2424_v47  ;;  %1525 = vmatpush.msra.mxu3 %v1656_v40 }
 0x946   :  { %v1397_v61 = vadd.f32 -5.6925062e-05, %v1395_v59  ;;  %v1390_v62 = vadd.f32 2.7706815e-08, %v1388_v53  ;;  %v1416_v63 = vadd.f32 -0.00021337405, %v1414_v60 }
 0x947   :  { %v1423_v1 = vadd.f32 -0.0073733293, %v1421_v52 }
 0x948   :  { %v1399_v3 = vmul.f32 %v1397_v61, %v1385_v43  ;;  %v1392_v5 = vmul.f32 %v1390_v62, %v2438_v57  ;;  %v1418_v7 = vmul.f32 %v1416_v63, %v2438_v57 }
 0x949   :  { %v1425_v10 = vmul.f32 %v1423_v1, %v1385_v43 }
 0x94a   :  { %v1401_v11 = vadd.f32 -0.00073499064, %v1399_v3  ;;  %v1394_v12 = vadd.f32 -2.101024e-06, %v1392_v5  ;;  %v1420_v14 = vadd.f32 -0.001682827, %v1418_v7 }
 0x94b   :  { %v1427_v13 = vadd.f32 -0.014264739, %v1425_v10  ;;  %v1378_v5 = vmul.f32 0.5, %v2431_v49 }
 0x94c   :  { %v1403_v2 = vmul.f32 %v1401_v11, %v1385_v43  ;;  %v1396_v19 = vmul.f32 %v1394_v12, %v2438_v57  ;;  %v1422_v25 = vmul.f32 %v1420_v14, %v2438_v57  ;;  %v1655_v11 = vld [vmem:[%s2517_s6 + $0x120] sm:$0xff] }
 0x94d   :  { %1718 = vrcp.f32 %v1427_v13  ;;  %v1438_v37 = vand.u32 2147483647, %v1427_v13  ;;  %v1440_v22 = vand.u32 2147483648, %v1427_v13  ;;  %vm1434_vm15 = vweird.f32 %v1427_v13  ;;  %1526 = vmatpush.msra.mxu3 %v1655_v11 }
 0x94e   :  { %v1398_v0 = vadd.f32 -5.6925062e-05, %v1396_v19  ;;  %v1424_v8 = vadd.f32 -0.0073733293, %v1422_v25  ;;  %v1405_v15 = vadd.f32 -0.0029546, %v1403_v2 }
 0x94f   :  { %vm1439_vm8 = vcmp.eq.f32.partialorder %v1438_v37, 8.507059e+37 }
 0x950   :  { %v1400_v32 = vmul.f32 %v1398_v0, %v2438_v57  ;;  %v1426_v9 = vmul.f32 %v1424_v8, %v2438_v57  ;;  %v1407_v18 = vmul.f32 %v1405_v15, %v1385_v43  ;;  %v1441_v43 = vor.u32 1.1754944e-38, %v1440_v22  ;;  %v1689_v0 = vld [vmem:[%s2518_s7 + $0x3] ss:$0 sm:$0xff]  ;;  %s1754_s7 = smov 128  }
 0x952   :  { %v1402_v26 = vadd.f32 -0.00073499064, %v1400_v32  ;;  %v1428_v23 = vadd.f32 -0.014264739, %v1426_v9  ;;  %v1409_v16 = vadd.f32 -0.016096033, %v1407_v18 }
 0x953   :  { %v1719_v39 = vpop.eup %1718 }
 0x954   :  { %v1404_v38 = vmul.f32 %v1402_v26, %v2438_v57  ;;  %v1430_v42 = vmul.f32 %v1719_v39, %v1427_v13  ;;  %1720 = vrcp.f32 %v1428_v23  ;;  %vm1435_vm5 = vweird.f32 %v1719_v39 }
 0x955   :  { %vm1436_vm6 = vmor %vm1434_vm15, %vm1435_vm5  ;;  %v1411_v20 = vmul.f32 %v2427_v28, %v1409_v16  ;;  %v1453_v59 = vand.u32 2147483647, %v1428_v23  ;;  %v1455_v28 = vand.u32 2147483648, %v1428_v23  ;;  %vm1449_vm10 = vweird.f32 %v1428_v23 }
 0x956   :  { %v1431_v29 = vsub.f32 1.0, %v1430_v42  ;;  %v1406_v21 = vadd.f32 -0.0029546, %v1404_v38 }
 0x957   :  { %v1456_v62 = vor.u32 1.1754944e-38, %v1455_v28  ;;  %vm1454_vm0 = vcmp.eq.f32.partialorder %v1453_v59, 8.507059e+37 }
 0x958   :  { %v1432_v41 = vmul.f32 %v1719_v39, %v1431_v29  ;;  %v1408_v34 = vmul.f32 %v1406_v21, %v2438_v57 }
 0x95a   :  { %v1433_v35 = vadd.f32 %v1719_v39, %v1432_v41  ;;  %v1721_v36 = vpop.eup %1720  ;;  %v1410_v57 = vadd.f32 -0.016096033, %v1408_v34 }
 0x95b   :  { %v1445_v50 = vmul.f32 %v1721_v36, %v1428_v23  ;;  %vm1450_vm9 = vweird.f32 %v1721_v36 }
 0x95c   :  { %v1437_v27 = vsel %vm1436_vm6, %v1719_v39, %v1433_v35  ;;  %vm1451_vm14 = vmor %vm1449_vm10, %vm1450_vm9  ;;  %v1412_v63 = vmul.f32 %v2434_v56, %v1410_v57  ;;  %v1493_v56 = vpop.permute.xlu2 %1492 }
 0x95d   :  { %v1442_v55 = vsel %vm1439_vm8, %v1441_v43, %v1437_v27  ;;  %v1446_v48 = vsub.f32 1.0, %v1445_v50 }
 0x95e   :  { %v1443_v51 = vmul.f32 %v1442_v55, %v1411_v20 }
 0x95f   :  { %v1447_v60 = vmul.f32 %v1721_v36, %v1446_v48 }
 0x960   :  { %v1459_v53 = vadd.f32 1.0, %v1443_v51 }
 0x961   :  { %v1448_v61 = vadd.f32 %v1721_v36, %v1447_v60 }
 0x962   :  { %v1461_v52 = vmul.f32 %v1459_v53, %v1377_v58 }
 0x963   :  { %v1452_v1 = vsel %vm1451_vm14, %v1721_v36, %v1448_v61 }
 0x964   :  { %1484 = vrot.lane.b32.xlu1 %v1461_v52, %s1751_s21  ;;  %v1457_v47 = vsel %vm1454_vm0, %v1456_v62, %v1452_v1 }
 0x965   :  { %v1458_v3 = vmul.f32 %v1457_v47, %v1412_v63 }
 0x967   :  { %v1460_v7 = vadd.f32 1.0, %v1458_v3 }
 0x969   :  { %v1462_v10 = vmul.f32 %v1460_v7, %v1378_v5 }
 0x96b   :  { %1486 = vrot.lane.b32.xlu0 %v1462_v10, %s1751_s21 }
 0x96c   :  { %1494 = vrot.lane.b32.xlu1 %v1748_v4, %s1752_s22  ;;  %v1202_v4 = vpop.f32.mrf.mxu3 }
 0x96d   :  { %v1203_v24 = vadd.f32 %v1687_v31, %v1202_v4 }
 0x974   :  { %v1205_v30 = vpop.f32.mrf.mxu3 }
 0x975   :  { %v1206_v33 = vadd.f32 %v1687_v31, %v1205_v30 }
 0x9d6   :  { %v1485_v12 = vpop.permute.xlu1 %1484 }
 0x9d7   :  { %v1498_v14 = vsel %vm284_vm11, 0.0, %v1485_v12 }
 0x9d8   :  { %v1500_v13 = vsel %vm287_vm12, %v1498_v14, %v1493_v56 }
 0x9d9   :  { %1668 = vmatmul.msk.f32.vlgmr.msra.gmra.mxu3 %vm293_vm13, %v1500_v13 }
 0x9dd   :  { %v1487_v49 = vpop.permute.xlu0 %1486 }
 0x9de   :  { %v1495_v2 = vpop.permute.xlu1 %1494  ;;  %v1499_v19 = vsel %vm284_vm11, 0.0, %v1487_v49 }
 0x9df   :  { %v1501_v25 = vsel %vm287_vm12, %v1499_v19, %v1495_v2 }
 0x9e1   :  { %1669 = vmatmul.msk.f32.gmra.mxu3 %vm293_vm13, %v1501_v25 }
 0xa5c   :  { %v1528_v8 = vpop.f32.mrf.mxu3 }
 0xa5d   :  { %v1529_v15 = vadd.f32 %v1689_v0, %v1528_v8 }
 0xa5f   :  { %v1534_v32 = vadd.f32 %v1529_v15, %v1203_v24 }
 0xa61   :  { %1536 = vst.msk [vmem:[#allocation2] sm:$0xff] %vm284_vm11, %v1534_v32 }
 0xa64   :  { %v1531_v9 = vpop.f32.mrf.mxu3 }
 0xa65   :  { %v1532_v26 = vadd.f32 %v1689_v0, %v1531_v9 }
 0xa67   :  { %v1535_v23 = vadd.f32 %v1532_v26, %v1206_v33 }
 0xa69   :  { %1537 = vst.msk [vmem:[#allocation2 + $0x8] sm:$0xff] %vm284_vm11, %v1535_v23 }
 0xa6a   :  { %1550 = dma.vmem_to_hbm [thread:$0]  %s1543_s5, 256, %s1545_s26, [#allocation3], %s1754_s7, %s1754_s7, %s1755_s9  }
 0xa6b   :  { %1746 = dma.done.wait [#allocation3], 256  }
 0xa6c   :  { %1747 = vsyncadd [#allocation3], 4294967040 }
 0xa6d   :  { %1555 = vsyncpa [#allocation3], 1 }

</bundles_post_ra>
